<compile_context>
chip_gen: v7x
topology: tpu7x:2x2x1
jax: 0.10.0
libtpu: 0.0.40
codegen_flags: <defaults>
</compile_context>

<pallas_src>
import functools

import jax
import jax.numpy as jnp
from jax.experimental import pallas as pl
from jax.experimental.pallas import tpu as pltpu

LN_EPS = 1e-12                               # HF BertConfig layer_norm_eps
NEG_INF = float(jnp.finfo(jnp.float32).min)  # HF uses torch.finfo(dtype).min (finite)
LOGIT_PAD = 128                              # lane-dense classifier output width


def _layer_norm(x, gamma, beta, eps=LN_EPS):
    mu = jnp.mean(x, axis=-1, keepdims=True)
    var = jnp.mean(jnp.square(x - mu), axis=-1, keepdims=True)
    return (x - mu) * jax.lax.rsqrt(var + eps) * gamma + beta


# --------------------- fused forward kernel (grid = (B, L)) -----------------------
def fused_forward_kernel(
        emb_ref, bias_ref, postype_ref, eg_ref, eb_ref,
        wqkv_ref, bqkv_ref, wo_ref, bo_ref, ln1g_ref, ln1b_ref,
        w1_ref, b1_ref, w2_ref, b2_ref, ln2g_ref, ln2b_ref,
        wp_ref, bp_ref, wc_ref, bc_ref,
        logits_ref, hid_ref, *, n_heads):
    layer = pl.program_id(1)
    n_layers = pl.num_programs(1)

    # ---- BERT embedding combine (+pos, +token-type) + LayerNorm, layer 0 only ----
    @pl.when(layer == 0)
    def _():
        e = emb_ref[...] + postype_ref[...]                          # (S, D)
        hid_ref[...] = _layer_norm(e, eg_ref[...], eb_ref[...])

    x = hid_ref[...]                                                 # (S, D) f32
    S, D = x.shape
    hd = D // n_heads

    # ---- fused QKV projection, batched over heads (no per-head Python loop) ----
    # 1/sqrt(hd) is pre-folded into the Q columns of wqkv/bqkv.
    x_bf = x.astype(jnp.bfloat16)
    x_h = jnp.broadcast_to(x_bf, (n_heads, S, D))                    # (H, S, D)
    qkv = jax.lax.dot_general(
        x_h, wqkv_ref[...], (((2,), (1,)), ((0,), (0,))),
        preferred_element_type=jnp.float32) + bqkv_ref[...]          # (H, S, 3*hd)
    q = qkv[:, :, :hd]                                               # already scaled
    k = qkv[:, :, hd:2 * hd]
    v = qkv[:, :, 2 * hd:]

    # ---- attention scores, additive HF-style key mask (kept finite -> no NaN) ----
    scores = jax.lax.dot_general(
        q.astype(jnp.bfloat16), k.astype(jnp.bfloat16),
        (((2,), (2,)), ((0,), (0,))),
        preferred_element_type=jnp.float32)                          # (H, S, S)
    scores = scores + bias_ref[...]                                  # (1, S) broadcast over keys
    scores = scores - jnp.max(scores, axis=-1, keepdims=True)
    p = jnp.exp(scores)
    p = p * pl.reciprocal(jnp.sum(p, axis=-1, keepdims=True), approx=True)

    ctx = jax.lax.dot_general(
        p.astype(jnp.bfloat16), v.astype(jnp.bfloat16),
        (((2,), (1,)), ((0,), (0,))),
        preferred_element_type=jnp.float32)                          # (H, S, hd)

    # ---- output projection with head-merge folded in: sum_h ctx_h @ Wo_h ----
    attn = jax.lax.dot_general(
        ctx.astype(jnp.bfloat16), wo_ref[...], (((2,), (1,)), ((0,), (0,))),
        preferred_element_type=jnp.float32)                          # (H, S, D)
    attn = jnp.sum(attn, axis=0) + bo_ref[...]                       # (S, D)
    x1 = _layer_norm(x + attn, ln1g_ref[...], ln1b_ref[...])

    # ---- GELU FFN + add & LN ----
    inter = jnp.dot(x1.astype(jnp.bfloat16), w1_ref[...],
                    preferred_element_type=jnp.float32) + b1_ref[...]
    # TODO(synk): HF BERT uses exact erf-GELU; tanh approximation used for TPU lowering safety.
    inter = jax.nn.gelu(inter, approximate=True)
    ffn = jnp.dot(inter.astype(jnp.bfloat16), w2_ref[...],
                  preferred_element_type=jnp.float32) + b2_ref[...]
    out = _layer_norm(x1 + ffn, ln2g_ref[...], ln2b_ref[...])
    hid_ref[...] = out

    # ---- pooler (first token, Linear+tanh) + padded classifier, last layer only ----
    @pl.when(layer == n_layers - 1)
    def _():
        h0 = out[0:1, :]                                             # (1, D)
        pooled = jnp.tanh(jnp.dot(h0.astype(jnp.bfloat16), wp_ref[...],
                                  preferred_element_type=jnp.float32) + bp_ref[...])
        logits_ref[...] = jnp.dot(pooled.astype(jnp.bfloat16), wc_ref[...],
                                  preferred_element_type=jnp.float32) + bc_ref[...]


# ----------------------------------- wrapper ---------------------------------------
def forward(tokens, params, n_heads):
    B, S, F = tokens.shape
    # per-feature embedding lookup + concat (gather = glue, stays in plain JAX)
    embeds = jnp.concatenate(
        [jnp.take(params["tok_emb"][i], tokens[:, :, i], axis=0) for i in range(F)],
        axis=-1)                                                     # (B, S, D) f32
    # attention_mask computed on the *embedded* x, as in the PyTorch forward
    mask = jnp.any(embeds != -1.0, axis=-1).astype(jnp.float32)      # (B, S)
    bias = ((1.0 - mask) * NEG_INF)[:, None, :]                      # (B, 1, S) additive

    D = embeds.shape[-1]
    H = n_heads
    hd = D // H
    L = params["wqkv"].shape[0]
    I = params["w1"].shape[-1]

    # position + token-type embeddings combined once here (one add, outside the grid)
    pos_type = params["pos_emb"][:S] + params["type_emb"]            # (S, D)

    kernel = functools.partial(fused_forward_kernel, n_heads=n_heads)

    per_batch = lambda r: (lambda b, l: tuple([b] + [0] * (r - 1)))
    per_layer = lambda r: (lambda b, l: tuple([l] + [0] * (r - 1)))
    const = lambda r: (lambda b, l: (0,) * r)

    logits_pad = pl.pallas_call(
        kernel,
        out_shape=jax.ShapeDtypeStruct((B, 1, LOGIT_PAD), jnp.float32),
        grid=(B, L),
        in_specs=[
            pl.BlockSpec((None, S, D), per_batch(3)),                # embeds
            pl.BlockSpec((None, 1, S), per_batch(3)),                # additive key mask
            pl.BlockSpec((S, D), const(2)),                          # pos + token-type emb
            pl.BlockSpec((1, D), const(2)),                          # emb LN gamma
            pl.BlockSpec((1, D), const(2)),                          # emb LN beta
            pl.BlockSpec((None, H, D, 3 * hd), per_layer(4)),        # fused QKV weight
            pl.BlockSpec((None, H, 1, 3 * hd), per_layer(4)),        # fused QKV bias
            pl.BlockSpec((None, H, hd, D), per_layer(4)),            # attn out proj (per head)
            pl.BlockSpec((None, 1, D), per_layer(3)),                # attn out bias
            pl.BlockSpec((None, 1, D), per_layer(3)),                # LN1 gamma
            pl.BlockSpec((None, 1, D), per_layer(3)),                # LN1 beta
            pl.BlockSpec((None, D, I), per_layer(3)),                # FFN w1
            pl.BlockSpec((None, 1, I), per_layer(3)),                # FFN b1
            pl.BlockSpec((None, I, D), per_layer(3)),                # FFN w2
            pl.BlockSpec((None, 1, D), per_layer(3)),                # FFN b2
            pl.BlockSpec((None, 1, D), per_layer(3)),                # LN2 gamma
            pl.BlockSpec((None, 1, D), per_layer(3)),                # LN2 beta
            pl.BlockSpec((D, D), const(2)),                          # pooler W
            pl.BlockSpec((1, D), const(2)),                          # pooler b
            pl.BlockSpec((D, LOGIT_PAD), const(2)),                  # classifier W (padded)
            pl.BlockSpec((1, LOGIT_PAD), const(2)),                  # classifier b (padded)
        ],
        out_specs=pl.BlockSpec((None, 1, LOGIT_PAD), per_batch(3)),
        scratch_shapes=[pltpu.VMEM((S, D), jnp.float32)],            # resident hidden state
        compiler_params=pltpu.CompilerParams(
            dimension_semantics=("parallel", "arbitrary")),
    )(embeds, bias, pos_type,
      params["emb_ln_g"], params["emb_ln_b"],
      params["wqkv"], params["bqkv"], params["wo"], params["bo"],
      params["ln1_g"], params["ln1_b"],
      params["w1"], params["b1"], params["w2"], params["b2"],
      params["ln2_g"], params["ln2_b"],
      params["pooler_w"], params["pooler_b"],
      params["cls_w_pad"], params["cls_b_pad"])

    return logits_pad[:, 0, :2]                                      # (B, 2)


# ----------------------------- parameter construction ------------------------------
def init_params(key, vocab_size, n_features, d_model, n_layers, max_len,
                inter_size, n_heads):
    hd = d_model // n_heads
    feature_dim = d_model // n_features
    scale = hd ** -0.5
    keys = jax.random.split(key, 8 + n_layers)
    init = lambda k, shape: (0.02 * jax.random.normal(k, shape)).astype(jnp.float32)
    ones = lambda s: jnp.ones(s, jnp.float32)
    zeros = lambda s: jnp.zeros(s, jnp.float32)

    def split_heads_cols(w):     # (D, D) -> (H, D, hd): per-head output columns
        return w.reshape(d_model, n_heads, hd).transpose(1, 0, 2)

    wqkv, bqkv, wo, bo = [], [], [], []
    ln1g, ln1b, w1s, b1s, w2s, b2s, ln2g, ln2b = [], [], [], [], [], [], [], []
    for l in range(n_layers):
        lk = jax.random.split(keys[8 + l], 6)
        wq, wk, wv = (init(lk[i], (d_model, d_model)) for i in range(3))
        bq, bk, bv = zeros((n_heads, 1, hd)), zeros((n_heads, 1, hd)), zeros((n_heads, 1, hd))
        # fold 1/sqrt(hd) attention scale into the Q projection (weight + bias)
        wqkv.append(jnp.concatenate(
            [split_heads_cols(wq) * scale, split_heads_cols(wk), split_heads_cols(wv)],
            axis=-1))                                                # (H, D, 3*hd)
        bqkv.append(jnp.concatenate([bq * scale, bk, bv], axis=-1))  # (H, 1, 3*hd)
        wo.append(init(lk[3], (d_model, d_model)).reshape(n_heads, hd, d_model))
        bo.append(zeros((1, d_model)))
        ln1g.append(ones((1, d_model))); ln1b.append(zeros((1, d_model)))
        w1s.append(init(lk[4], (d_model, inter_size))); b1s.append(zeros((1, inter_size)))
        w2s.append(init(lk[5], (inter_size, d_model))); b2s.append(zeros((1, d_model)))
        ln2g.append(ones((1, d_model))); ln2b.append(zeros((1, d_model)))

    stack = lambda xs: jnp.stack(xs, axis=0)
    cls_w = init(keys[4], (d_model, 2))
    cls_b = zeros((1, 2))

    return {
        "tok_emb": [init(jax.random.fold_in(keys[0], i), (vocab_size, feature_dim))
                    for i in range(n_features)],
        "pos_emb": init(keys[1], (max_len, d_model)),
        "type_emb": init(keys[2], (1, d_model)),
        "emb_ln_g": ones((1, d_model)), "emb_ln_b": zeros((1, d_model)),
        # MXU-facing weights stored as bf16 (f32 accumulation in-kernel)
        "wqkv": stack(wqkv).astype(jnp.bfloat16),
        "bqkv": stack(bqkv),
        "wo": stack(wo).astype(jnp.bfloat16),
        "bo": stack(bo),
        "ln1_g": stack(ln1g), "ln1_b": stack(ln1b),
        "w1": stack(w1s).astype(jnp.bfloat16), "b1": stack(b1s),
        "w2": stack(w2s).astype(jnp.bfloat16), "b2": stack(b2s),
        "ln2_g": stack(ln2g), "ln2_b": stack(ln2b),
        "pooler_w": init(keys[3], (d_model, d_model)).astype(jnp.bfloat16),
        "pooler_b": zeros((1, d_model)),
        "cls_w_pad": jnp.pad(cls_w, ((0, 0), (0, LOGIT_PAD - 2))).astype(jnp.bfloat16),
        "cls_b_pad": jnp.pad(cls_b, ((0, 0), (0, LOGIT_PAD - 2))),
    }


if __name__ == "__main__":
    # small shapes consistent with the module
    vocab_size, n_features = 16, 4
    n_heads, n_layers = 4, 2
    d_model_req, max_len = 32, 64
    B, S = 2, 8
    # same rounding as the PyTorch __init__
    d_model = d_model_req // n_features // n_heads * n_features * n_heads
    # TODO(synk): HF bert-base config keeps intermediate_size=3072; scaled to 4*d_model here.
    inter_size = 4 * d_model

    key = jax.random.PRNGKey(0)
    pkey, xkey = jax.random.split(key)
    params = init_params(pkey, vocab_size, n_features, d_model, n_layers,
                         max_len, inter_size, n_heads)
    tokens = jax.random.randint(xkey, (B, S, n_features), 0, vocab_size,
                                dtype=jnp.int32)

    logits = forward(tokens, params, n_heads)
    logits = jax.block_until_ready(logits)
    assert logits.shape == (B, 2) and logits.dtype == jnp.float32
    print("KERNEL_OK")
</pallas_src>

<mosaic_0001>
module attributes {stable_mosaic.version = 11 : i64} {
  func.func @fused_forward_kernel(%arg0: i32, %arg1: i32, %arg2: memref<1x8x32xf32, #tpu.memory_space<vmem>>, %arg3: memref<1x1x8xf32, #tpu.memory_space<vmem>>, %arg4: memref<8x32xf32, #tpu.memory_space<vmem>>, %arg5: memref<1x32xf32, #tpu.memory_space<vmem>>, %arg6: memref<1x32xf32, #tpu.memory_space<vmem>>, %arg7: memref<1x4x32x24xbf16, #tpu.memory_space<vmem>>, %arg8: memref<1x4x1x24xf32, #tpu.memory_space<vmem>>, %arg9: memref<1x4x8x32xbf16, #tpu.memory_space<vmem>>, %arg10: memref<1x1x32xf32, #tpu.memory_space<vmem>>, %arg11: memref<1x1x32xf32, #tpu.memory_space<vmem>>, %arg12: memref<1x1x32xf32, #tpu.memory_space<vmem>>, %arg13: memref<1x32x128xbf16, #tpu.memory_space<vmem>>, %arg14: memref<1x1x128xf32, #tpu.memory_space<vmem>>, %arg15: memref<1x128x32xbf16, #tpu.memory_space<vmem>>, %arg16: memref<1x1x32xf32, #tpu.memory_space<vmem>>, %arg17: memref<1x1x32xf32, #tpu.memory_space<vmem>>, %arg18: memref<1x1x32xf32, #tpu.memory_space<vmem>>, %arg19: memref<32x32xbf16, #tpu.memory_space<vmem>>, %arg20: memref<1x32xf32, #tpu.memory_space<vmem>>, %arg21: memref<32x128xbf16, #tpu.memory_space<vmem>>, %arg22: memref<1x128xf32, #tpu.memory_space<vmem>>, %arg23: memref<1x1x128xf32, #tpu.memory_space<vmem>>, %arg24: memref<8x32xf32, #tpu.memory_space<vmem>>) attributes {dimension_semantics = [#tpu.dimension_semantics<parallel>, #tpu.dimension_semantics<arbitrary>], iteration_bounds = array<i64: 2, 2>, scalar_prefetch = 0 : i64, scratch_operands = 1 : i64, tpu.core_type = #tpu.core_type<tc>, window_params = [{transform_indices = @transform_0, window_bounds = array<i64: 1, 8, 32>}, {transform_indices = @transform_1, window_bounds = array<i64: 1, 1, 8>}, {pipeline_mode = #tpu.pipeline_mode<synchronous>, transform_indices = @transform_2, window_bounds = array<i64: 8, 32>}, {pipeline_mode = #tpu.pipeline_mode<synchronous>, transform_indices = @transform_3, window_bounds = array<i64: 1, 32>}, {pipeline_mode = #tpu.pipeline_mode<synchronous>, transform_indices = @transform_4, window_bounds = array<i64: 1, 32>}, {transform_indices = @transform_5, window_bounds = array<i64: 1, 4, 32, 24>}, {transform_indices = @transform_6, window_bounds = array<i64: 1, 4, 1, 24>}, {transform_indices = @transform_7, window_bounds = array<i64: 1, 4, 8, 32>}, {transform_indices = @transform_8, window_bounds = array<i64: 1, 1, 32>}, {transform_indices = @transform_9, window_bounds = array<i64: 1, 1, 32>}, {transform_indices = @transform_10, window_bounds = array<i64: 1, 1, 32>}, {transform_indices = @transform_11, window_bounds = array<i64: 1, 32, 128>}, {transform_indices = @transform_12, window_bounds = array<i64: 1, 1, 128>}, {transform_indices = @transform_13, window_bounds = array<i64: 1, 128, 32>}, {transform_indices = @transform_14, window_bounds = array<i64: 1, 1, 32>}, {transform_indices = @transform_15, window_bounds = array<i64: 1, 1, 32>}, {transform_indices = @transform_16, window_bounds = array<i64: 1, 1, 32>}, {pipeline_mode = #tpu.pipeline_mode<synchronous>, transform_indices = @transform_17, window_bounds = array<i64: 32, 32>}, {pipeline_mode = #tpu.pipeline_mode<synchronous>, transform_indices = @transform_18, window_bounds = array<i64: 1, 32>}, {pipeline_mode = #tpu.pipeline_mode<synchronous>, transform_indices = @transform_19, window_bounds = array<i64: 32, 128>}, {pipeline_mode = #tpu.pipeline_mode<synchronous>, transform_indices = @transform_20, window_bounds = array<i64: 1, 128>}, {transform_indices = @transform_21, window_bounds = array<i64: 1, 1, 128>}]} {
    %c0_i32 = arith.constant 0 : i32
    %0 = arith.cmpi eq, %arg1, %c0_i32 : i32
    %1 = arith.extui %0 : i1 to i32
    %c0_i32_0 = arith.constant 0 : i32
    %2 = arith.cmpi ne, %1, %c0_i32_0 : i32
    scf.if %2 {
      %c0_69 = arith.constant 0 : index
      %c0_70 = arith.constant 0 : index
      %c0_71 = arith.constant 0 : index
      %134 = vector.load %arg2[%c0_69, %c0_70, %c0_71] : memref<1x8x32xf32, #tpu.memory_space<vmem>>, vector<1x8x32xf32>
      %135 = vector.shape_cast %134 : vector<1x8x32xf32> to vector<8x32xf32>
      %c0_72 = arith.constant 0 : index
      %c0_73 = arith.constant 0 : index
      %136 = vector.load %arg4[%c0_72, %c0_73] : memref<8x32xf32, #tpu.memory_space<vmem>>, vector<8x32xf32>
      %137 = arith.addf %135, %136 : vector<8x32xf32>
      %c0_74 = arith.constant 0 : index
      %c0_75 = arith.constant 0 : index
      %138 = vector.load %arg5[%c0_74, %c0_75] : memref<1x32xf32, #tpu.memory_space<vmem>>, vector<1x32xf32>
      %c0_76 = arith.constant 0 : index
      %c0_77 = arith.constant 0 : index
      %139 = vector.load %arg6[%c0_76, %c0_77] : memref<1x32xf32, #tpu.memory_space<vmem>>, vector<1x32xf32>
      %cst_78 = arith.constant dense<0.000000e+00> : vector<8xf32>
      %140 = vector.multi_reduction <add>, %137, %cst_78 [1] : vector<8x32xf32> to vector<8xf32>
      %141 = vector.shape_cast %140 : vector<8xf32> to vector<8x1xf32>
      %cst_79 = arith.constant 3.200000e+01 : f32
      %142 = vector.broadcast %cst_79 : f32 to vector<8x1xf32>
      %143 = arith.divf %141, %142 : vector<8x1xf32>
      %144 = vector.broadcast %143 : vector<8x1xf32> to vector<8x32xf32>
      %145 = arith.subf %137, %144 : vector<8x32xf32>
      %146 = arith.mulf %145, %145 : vector<8x32xf32>
      %cst_80 = arith.constant dense<0.000000e+00> : vector<8xf32>
      %147 = vector.multi_reduction <add>, %146, %cst_80 [1] : vector<8x32xf32> to vector<8xf32>
      %148 = vector.shape_cast %147 : vector<8xf32> to vector<8x1xf32>
      %cst_81 = arith.constant 3.200000e+01 : f32
      %149 = vector.broadcast %cst_81 : f32 to vector<8x1xf32>
      %150 = arith.divf %148, %149 : vector<8x1xf32>
      %151 = vector.broadcast %143 : vector<8x1xf32> to vector<8x32xf32>
      %152 = arith.subf %137, %151 : vector<8x32xf32>
      %cst_82 = arith.constant 9.99999996E-13 : f32
      %153 = vector.broadcast %cst_82 : f32 to vector<8x1xf32>
      %154 = arith.addf %150, %153 : vector<8x1xf32>
      %155 = math.rsqrt %154 : vector<8x1xf32>
      %156 = vector.broadcast %155 : vector<8x1xf32> to vector<8x32xf32>
      %157 = arith.mulf %152, %156 : vector<8x32xf32>
      %158 = vector.broadcast %138 : vector<1x32xf32> to vector<8x32xf32>
      %159 = arith.mulf %157, %158 : vector<8x32xf32>
      %160 = vector.broadcast %139 : vector<1x32xf32> to vector<8x32xf32>
      %161 = arith.addf %159, %160 : vector<8x32xf32>
      %c0_83 = arith.constant 0 : index
      %c0_84 = arith.constant 0 : index
      %162 = vector.load %arg24[%c0_83, %c0_84] : memref<8x32xf32, #tpu.memory_space<vmem>>, vector<8x32xf32>
      tpu.vector_store %arg24[%c0_83, %c0_84], %161 {strides = array<i32>} : memref<8x32xf32, #tpu.memory_space<vmem>>, vector<8x32xf32>,
    } else {
    }
    %c0 = arith.constant 0 : index
    %c0_1 = arith.constant 0 : index
    %3 = vector.load %arg24[%c0, %c0_1] : memref<8x32xf32, #tpu.memory_space<vmem>>, vector<8x32xf32>
    %4 = arith.truncf %3 : vector<8x32xf32> to vector<8x32xbf16>
    %5 = vector.shape_cast %4 : vector<8x32xbf16> to vector<1x8x32xbf16>
    %6 = vector.broadcast %5 : vector<1x8x32xbf16> to vector<4x8x32xbf16>
    %c0_2 = arith.constant 0 : index
    %c0_3 = arith.constant 0 : index
    %c0_4 = arith.constant 0 : index
    %c0_5 = arith.constant 0 : index
    %7 = vector.load %arg7[%c0_2, %c0_3, %c0_4, %c0_5] : memref<1x4x32x24xbf16, #tpu.memory_space<vmem>>, vector<1x4x32x24xbf16>
    %8 = vector.shape_cast %7 : vector<1x4x32x24xbf16> to vector<4x32x24xbf16>
    %cst = arith.constant dense<0.000000e+00> : vector<4x8x24xf32>
    %9 = tpu.matmul %6, %8, %cst {dimension_numbers = #tpu.dot_dimension_numbers<[2], [1], [1], [2], [0, 0, 0, 1, 1, 2], [0], [0]>} : vector<4x8x32xbf16>, vector<4x32x24xbf16>, vector<4x8x24xf32> -> vector<4x8x24xf32>
    %c0_6 = arith.constant 0 : index
    %c0_7 = arith.constant 0 : index
    %c0_8 = arith.constant 0 : index
    %c0_9 = arith.constant 0 : index
    %10 = vector.load %arg8[%c0_6, %c0_7, %c0_8, %c0_9] : memref<1x4x1x24xf32, #tpu.memory_space<vmem>>, vector<1x4x1x24xf32>
    %11 = vector.shape_cast %10 : vector<1x4x1x24xf32> to vector<4x1x24xf32>
    %12 = vector.broadcast %11 : vector<4x1x24xf32> to vector<4x8x24xf32>
    %13 = arith.addf %9, %12 : vector<4x8x24xf32>
    %14 = vector.extract_strided_slice %13 {offsets = [0, 0, 0], sizes = [4, 8, 8], strides = [1, 1, 1]} : vector<4x8x24xf32> to vector<4x8x8xf32>
    %15 = vector.extract_strided_slice %13 {offsets = [0, 0, 8], sizes = [4, 8, 8], strides = [1, 1, 1]} : vector<4x8x24xf32> to vector<4x8x8xf32>
    %16 = vector.extract_strided_slice %13 {offsets = [0, 0, 16], sizes = [4, 8, 8], strides = [1, 1, 1]} : vector<4x8x24xf32> to vector<4x8x8xf32>
    %17 = arith.truncf %14 : vector<4x8x8xf32> to vector<4x8x8xbf16>
    %18 = arith.truncf %15 : vector<4x8x8xf32> to vector<4x8x8xbf16>
    %cst_10 = arith.constant dense<0.000000e+00> : vector<4x8x8xf32>
    %19 = tpu.matmul %17, %18, %cst_10 {dimension_numbers = #tpu.dot_dimension_numbers<[2], [2], [1], [1], [0, 0, 0, 1, 1, 1], [0], [0]>} : vector<4x8x8xbf16>, vector<4x8x8xbf16>, vector<4x8x8xf32> -> vector<4x8x8xf32>
    %c0_11 = arith.constant 0 : index
    %c0_12 = arith.constant 0 : index
    %c0_13 = arith.constant 0 : index
    %20 = vector.load %arg3[%c0_11, %c0_12, %c0_13] : memref<1x1x8xf32, #tpu.memory_space<vmem>>, vector<1x1x8xf32>
    %21 = vector.shape_cast %20 : vector<1x1x8xf32> to vector<1x8xf32>
    %22 = vector.shape_cast %21 : vector<1x8xf32> to vector<1x1x8xf32>
    %23 = vector.broadcast %22 : vector<1x1x8xf32> to vector<4x8x8xf32>
    %24 = arith.addf %19, %23 : vector<4x8x8xf32>
    %cst_14 = arith.constant dense<0xFF800000> : vector<4x8xf32>
    %25 = vector.multi_reduction <maximumf>, %24, %cst_14 [2] : vector<4x8x8xf32> to vector<4x8xf32>
    %26 = vector.shape_cast %25 : vector<4x8xf32> to vector<4x8x1xf32>
    %27 = vector.broadcast %26 : vector<4x8x1xf32> to vector<4x8x8xf32>
    %28 = arith.subf %24, %27 : vector<4x8x8xf32>
    %29 = math.exp %28 : vector<4x8x8xf32>
    %cst_15 = arith.constant dense<0.000000e+00> : vector<4x8xf32>
    %30 = vector.multi_reduction <add>, %29, %cst_15 [2] : vector<4x8x8xf32> to vector<4x8xf32>
    %31 = vector.shape_cast %30 : vector<4x8xf32> to vector<4x8x1xf32>
    %32 = tpu.reciprocal %31 {approx = true} : vector<4x8x1xf32> -> vector<4x8x1xf32>
    %33 = vector.broadcast %32 : vector<4x8x1xf32> to vector<4x8x8xf32>
    %34 = arith.mulf %29, %33 : vector<4x8x8xf32>
    %35 = arith.truncf %34 : vector<4x8x8xf32> to vector<4x8x8xbf16>
    %36 = arith.truncf %16 : vector<4x8x8xf32> to vector<4x8x8xbf16>
    %cst_16 = arith.constant dense<0.000000e+00> : vector<4x8x8xf32>
    %37 = tpu.matmul %35, %36, %cst_16 {dimension_numbers = #tpu.dot_dimension_numbers<[2], [1], [1], [2], [0, 0, 0, 1, 1, 2], [0], [0]>} : vector<4x8x8xbf16>, vector<4x8x8xbf16>, vector<4x8x8xf32> -> vector<4x8x8xf32>
    %38 = arith.truncf %37 : vector<4x8x8xf32> to vector<4x8x8xbf16>
    %c0_17 = arith.constant 0 : index
    %c0_18 = arith.constant 0 : index
    %c0_19 = arith.constant 0 : index
    %c0_20 = arith.constant 0 : index
    %39 = vector.load %arg9[%c0_17, %c0_18, %c0_19, %c0_20] : memref<1x4x8x32xbf16, #tpu.memory_space<vmem>>, vector<1x4x8x32xbf16>
    %40 = vector.shape_cast %39 : vector<1x4x8x32xbf16> to vector<4x8x32xbf16>
    %cst_21 = arith.constant dense<0.000000e+00> : vector<4x8x32xf32>
    %41 = tpu.matmul %38, %40, %cst_21 {dimension_numbers = #tpu.dot_dimension_numbers<[2], [1], [1], [2], [0, 0, 0, 1, 1, 2], [0], [0]>} : vector<4x8x8xbf16>, vector<4x8x32xbf16>, vector<4x8x32xf32> -> vector<4x8x32xf32>
    %cst_22 = arith.constant dense<0.000000e+00> : vector<8x32xf32>
    %42 = vector.multi_reduction <add>, %41, %cst_22 [0] : vector<4x8x32xf32> to vector<8x32xf32>
    %c0_23 = arith.constant 0 : index
    %c0_24 = arith.constant 0 : index
    %c0_25 = arith.constant 0 : index
    %43 = vector.load %arg10[%c0_23, %c0_24, %c0_25] : memref<1x1x32xf32, #tpu.memory_space<vmem>>, vector<1x1x32xf32>
    %44 = vector.shape_cast %43 : vector<1x1x32xf32> to vector<1x32xf32>
    %45 = vector.broadcast %44 : vector<1x32xf32> to vector<8x32xf32>
    %46 = arith.addf %42, %45 : vector<8x32xf32>
    %47 = arith.addf %3, %46 : vector<8x32xf32>
    %c0_26 = arith.constant 0 : index
    %c0_27 = arith.constant 0 : index
    %c0_28 = arith.constant 0 : index
    %48 = vector.load %arg11[%c0_26, %c0_27, %c0_28] : memref<1x1x32xf32, #tpu.memory_space<vmem>>, vector<1x1x32xf32>
    %49 = vector.shape_cast %48 : vector<1x1x32xf32> to vector<1x32xf32>
    %c0_29 = arith.constant 0 : index
    %c0_30 = arith.constant 0 : index
    %c0_31 = arith.constant 0 : index
    %50 = vector.load %arg12[%c0_29, %c0_30, %c0_31] : memref<1x1x32xf32, #tpu.memory_space<vmem>>, vector<1x1x32xf32>
    %51 = vector.shape_cast %50 : vector<1x1x32xf32> to vector<1x32xf32>
    %cst_32 = arith.constant dense<0.000000e+00> : vector<8xf32>
    %52 = vector.multi_reduction <add>, %47, %cst_32 [1] : vector<8x32xf32> to vector<8xf32>
    %53 = vector.shape_cast %52 : vector<8xf32> to vector<8x1xf32>
    %cst_33 = arith.constant 3.200000e+01 : f32
    %54 = vector.broadcast %cst_33 : f32 to vector<8x1xf32>
    %55 = arith.divf %53, %54 : vector<8x1xf32>
    %56 = vector.broadcast %55 : vector<8x1xf32> to vector<8x32xf32>
    %57 = arith.subf %47, %56 : vector<8x32xf32>
    %58 = arith.mulf %57, %57 : vector<8x32xf32>
    %cst_34 = arith.constant dense<0.000000e+00> : vector<8xf32>
    %59 = vector.multi_reduction <add>, %58, %cst_34 [1] : vector<8x32xf32> to vector<8xf32>
    %60 = vector.shape_cast %59 : vector<8xf32> to vector<8x1xf32>
    %cst_35 = arith.constant 3.200000e+01 : f32
    %61 = vector.broadcast %cst_35 : f32 to vector<8x1xf32>
    %62 = arith.divf %60, %61 : vector<8x1xf32>
    %63 = vector.broadcast %55 : vector<8x1xf32> to vector<8x32xf32>
    %64 = arith.subf %47, %63 : vector<8x32xf32>
    %cst_36 = arith.constant 9.99999996E-13 : f32
    %65 = vector.broadcast %cst_36 : f32 to vector<8x1xf32>
    %66 = arith.addf %62, %65 : vector<8x1xf32>
    %67 = math.rsqrt %66 : vector<8x1xf32>
    %68 = vector.broadcast %67 : vector<8x1xf32> to vector<8x32xf32>
    %69 = arith.mulf %64, %68 : vector<8x32xf32>
    %70 = vector.broadcast %49 : vector<1x32xf32> to vector<8x32xf32>
    %71 = arith.mulf %69, %70 : vector<8x32xf32>
    %72 = vector.broadcast %51 : vector<1x32xf32> to vector<8x32xf32>
    %73 = arith.addf %71, %72 : vector<8x32xf32>
    %74 = arith.truncf %73 : vector<8x32xf32> to vector<8x32xbf16>
    %c0_37 = arith.constant 0 : index
    %c0_38 = arith.constant 0 : index
    %c0_39 = arith.constant 0 : index
    %75 = vector.load %arg13[%c0_37, %c0_38, %c0_39] : memref<1x32x128xbf16, #tpu.memory_space<vmem>>, vector<1x32x128xbf16>
    %76 = vector.shape_cast %75 : vector<1x32x128xbf16> to vector<32x128xbf16>
    %cst_40 = arith.constant dense<0.000000e+00> : vector<8x128xf32>
    %77 = tpu.matmul %74, %76, %cst_40 {dimension_numbers = #tpu.dot_dimension_numbers<[1], [0], [0], [1], [0, 0, 1, 1], [], []>} : vector<8x32xbf16>, vector<32x128xbf16>, vector<8x128xf32> -> vector<8x128xf32>
    %c0_41 = arith.constant 0 : index
    %c0_42 = arith.constant 0 : index
    %c0_43 = arith.constant 0 : index
    %78 = vector.load %arg14[%c0_41, %c0_42, %c0_43] : memref<1x1x128xf32, #tpu.memory_space<vmem>>, vector<1x1x128xf32>
    %79 = vector.shape_cast %78 : vector<1x1x128xf32> to vector<1x128xf32>
    %80 = vector.broadcast %79 : vector<1x128xf32> to vector<8x128xf32>
    %81 = arith.addf %77, %80 : vector<8x128xf32>
    %82 = arith.mulf %81, %81 : vector<8x128xf32>
    %83 = arith.mulf %81, %82 : vector<8x128xf32>
    %cst_44 = arith.constant 4.471500e-02 : f32
    %84 = vector.broadcast %cst_44 : f32 to vector<8x128xf32>
    %85 = arith.mulf %84, %83 : vector<8x128xf32>
    %86 = arith.addf %81, %85 : vector<8x128xf32>
    %cst_45 = arith.constant 0.797884583 : f32
    %87 = vector.broadcast %cst_45 : f32 to vector<8x128xf32>
    %88 = arith.mulf %87, %86 : vector<8x128xf32>
    %89 = math.tanh %88 : vector<8x128xf32>
    %cst_46 = arith.constant 1.000000e+00 : f32
    %90 = vector.broadcast %cst_46 : f32 to vector<8x128xf32>
    %91 = arith.addf %90, %89 : vector<8x128xf32>
    %cst_47 = arith.constant 5.000000e-01 : f32
    %92 = vector.broadcast %cst_47 : f32 to vector<8x128xf32>
    %93 = arith.mulf %92, %91 : vector<8x128xf32>
    %94 = arith.mulf %81, %93 : vector<8x128xf32>
    %95 = arith.truncf %94 : vector<8x128xf32> to vector<8x128xbf16>
    %c0_48 = arith.constant 0 : index
    %c0_49 = arith.constant 0 : index
    %c0_50 = arith.constant 0 : index
    %96 = vector.load %arg15[%c0_48, %c0_49, %c0_50] : memref<1x128x32xbf16, #tpu.memory_space<vmem>>, vector<1x128x32xbf16>
    %97 = vector.shape_cast %96 : vector<1x128x32xbf16> to vector<128x32xbf16>
    %cst_51 = arith.constant dense<0.000000e+00> : vector<8x32xf32>
    %98 = tpu.matmul %95, %97, %cst_51 {dimension_numbers = #tpu.dot_dimension_numbers<[1], [0], [0], [1], [0, 0, 1, 1], [], []>} : vector<8x128xbf16>, vector<128x32xbf16>, vector<8x32xf32> -> vector<8x32xf32>
    %c0_52 = arith.constant 0 : index
    %c0_53 = arith.constant 0 : index
    %c0_54 = arith.constant 0 : index
    %99 = vector.load %arg16[%c0_52, %c0_53, %c0_54] : memref<1x1x32xf32, #tpu.memory_space<vmem>>, vector<1x1x32xf32>
    %100 = vector.shape_cast %99 : vector<1x1x32xf32> to vector<1x32xf32>
    %101 = vector.broadcast %100 : vector<1x32xf32> to vector<8x32xf32>
    %102 = arith.addf %98, %101 : vector<8x32xf32>
    %103 = arith.addf %73, %102 : vector<8x32xf32>
    %c0_55 = arith.constant 0 : index
    %c0_56 = arith.constant 0 : index
    %c0_57 = arith.constant 0 : index
    %104 = vector.load %arg17[%c0_55, %c0_56, %c0_57] : memref<1x1x32xf32, #tpu.memory_space<vmem>>, vector<1x1x32xf32>
    %105 = vector.shape_cast %104 : vector<1x1x32xf32> to vector<1x32xf32>
    %c0_58 = arith.constant 0 : index
    %c0_59 = arith.constant 0 : index
    %c0_60 = arith.constant 0 : index
    %106 = vector.load %arg18[%c0_58, %c0_59, %c0_60] : memref<1x1x32xf32, #tpu.memory_space<vmem>>, vector<1x1x32xf32>
    %107 = vector.shape_cast %106 : vector<1x1x32xf32> to vector<1x32xf32>
    %cst_61 = arith.constant dense<0.000000e+00> : vector<8xf32>
    %108 = vector.multi_reduction <add>, %103, %cst_61 [1] : vector<8x32xf32> to vector<8xf32>
    %109 = vector.shape_cast %108 : vector<8xf32> to vector<8x1xf32>
    %cst_62 = arith.constant 3.200000e+01 : f32
    %110 = vector.broadcast %cst_62 : f32 to vector<8x1xf32>
    %111 = arith.divf %109, %110 : vector<8x1xf32>
    %112 = vector.broadcast %111 : vector<8x1xf32> to vector<8x32xf32>
    %113 = arith.subf %103, %112 : vector<8x32xf32>
    %114 = arith.mulf %113, %113 : vector<8x32xf32>
    %cst_63 = arith.constant dense<0.000000e+00> : vector<8xf32>
    %115 = vector.multi_reduction <add>, %114, %cst_63 [1] : vector<8x32xf32> to vector<8xf32>
    %116 = vector.shape_cast %115 : vector<8xf32> to vector<8x1xf32>
    %cst_64 = arith.constant 3.200000e+01 : f32
    %117 = vector.broadcast %cst_64 : f32 to vector<8x1xf32>
    %118 = arith.divf %116, %117 : vector<8x1xf32>
    %119 = vector.broadcast %111 : vector<8x1xf32> to vector<8x32xf32>
    %120 = arith.subf %103, %119 : vector<8x32xf32>
    %cst_65 = arith.constant 9.99999996E-13 : f32
    %121 = vector.broadcast %cst_65 : f32 to vector<8x1xf32>
    %122 = arith.addf %118, %121 : vector<8x1xf32>
    %123 = math.rsqrt %122 : vector<8x1xf32>
    %124 = vector.broadcast %123 : vector<8x1xf32> to vector<8x32xf32>
    %125 = arith.mulf %120, %124 : vector<8x32xf32>
    %126 = vector.broadcast %105 : vector<1x32xf32> to vector<8x32xf32>
    %127 = arith.mulf %125, %126 : vector<8x32xf32>
    %128 = vector.broadcast %107 : vector<1x32xf32> to vector<8x32xf32>
    %129 = arith.addf %127, %128 : vector<8x32xf32>
    %c0_66 = arith.constant 0 : index
    %c0_67 = arith.constant 0 : index
    %130 = vector.load %arg24[%c0_66, %c0_67] : memref<8x32xf32, #tpu.memory_space<vmem>>, vector<8x32xf32>
    tpu.vector_store %arg24[%c0_66, %c0_67], %129 {strides = array<i32>} : memref<8x32xf32, #tpu.memory_space<vmem>>, vector<8x32xf32>,
    %c1_i32 = arith.constant 1 : i32
    %131 = arith.cmpi eq, %arg1, %c1_i32 : i32
    %132 = arith.extui %131 : i1 to i32
    %c0_i32_68 = arith.constant 0 : i32
    %133 = arith.cmpi ne, %132, %c0_i32_68 : i32
    scf.if %133 {
      %134 = vector.extract_strided_slice %129 {offsets = [0, 0], sizes = [1, 32], strides = [1, 1]} : vector<8x32xf32> to vector<1x32xf32>
      %135 = arith.truncf %134 : vector<1x32xf32> to vector<1x32xbf16>
      %c0_69 = arith.constant 0 : index
      %c0_70 = arith.constant 0 : index
      %136 = vector.load %arg19[%c0_69, %c0_70] : memref<32x32xbf16, #tpu.memory_space<vmem>>, vector<32x32xbf16>
      %cst_71 = arith.constant dense<0.000000e+00> : vector<1x32xf32>
      %137 = tpu.matmul %135, %136, %cst_71 {dimension_numbers = #tpu.dot_dimension_numbers<[1], [0], [0], [1], [0, 0, 1, 1], [], []>} : vector<1x32xbf16>, vector<32x32xbf16>, vector<1x32xf32> -> vector<1x32xf32>
      %c0_72 = arith.constant 0 : index
      %c0_73 = arith.constant 0 : index
      %138 = vector.load %arg20[%c0_72, %c0_73] : memref<1x32xf32, #tpu.memory_space<vmem>>, vector<1x32xf32>
      %139 = arith.addf %137, %138 : vector<1x32xf32>
      %140 = math.tanh %139 : vector<1x32xf32>
      %141 = arith.truncf %140 : vector<1x32xf32> to vector<1x32xbf16>
      %c0_74 = arith.constant 0 : index
      %c0_75 = arith.constant 0 : index
      %142 = vector.load %arg21[%c0_74, %c0_75] : memref<32x128xbf16, #tpu.memory_space<vmem>>, vector<32x128xbf16>
      %cst_76 = arith.constant dense<0.000000e+00> : vector<1x128xf32>
      %143 = tpu.matmul %141, %142, %cst_76 {dimension_numbers = #tpu.dot_dimension_numbers<[1], [0], [0], [1], [0, 0, 1, 1], [], []>} : vector<1x32xbf16>, vector<32x128xbf16>, vector<1x128xf32> -> vector<1x128xf32>
      %c0_77 = arith.constant 0 : index
      %c0_78 = arith.constant 0 : index
      %144 = vector.load %arg22[%c0_77, %c0_78] : memref<1x128xf32, #tpu.memory_space<vmem>>, vector<1x128xf32>
      %145 = arith.addf %143, %144 : vector<1x128xf32>
      %c0_79 = arith.constant 0 : index
      %c0_80 = arith.constant 0 : index
      %c0_81 = arith.constant 0 : index
      %146 = vector.load %arg23[%c0_79, %c0_80, %c0_81] : memref<1x1x128xf32, #tpu.memory_space<vmem>>, vector<1x1x128xf32>
      %147 = vector.shape_cast %146 : vector<1x1x128xf32> to vector<1x128xf32>
      %148 = vector.shape_cast %145 : vector<1x128xf32> to vector<1x1x128xf32>
      tpu.vector_store %arg23[%c0_79, %c0_80, %c0_81], %148 {strides = array<i32>} : memref<1x1x128xf32, #tpu.memory_space<vmem>>, vector<1x1x128xf32>,
    } else {
    }
    return
  }
  func.func @transform_0(%arg0: i32, %arg1: i32) -> (i32, i32, i32) {
    %c0_i32 = arith.constant 0 : i32
    %c0_i32_0 = arith.constant 0 : i32
    %c0_i32_1 = arith.constant 0 : i32
    return %arg0, %c0_i32, %c0_i32_0 : i32, i32, i32
  }
  func.func @transform_1(%arg0: i32, %arg1: i32) -> (i32, i32, i32) {
    %c0_i32 = arith.constant 0 : i32
    %c0_i32_0 = arith.constant 0 : i32
    %c0_i32_1 = arith.constant 0 : i32
    return %arg0, %c0_i32, %c0_i32_0 : i32, i32, i32
  }
  func.func @transform_2(%arg0: i32, %arg1: i32) -> (i32, i32) {
    %c0_i32 = arith.constant 0 : i32
    %c0_i32_0 = arith.constant 0 : i32
    %c0_i32_1 = arith.constant 0 : i32
    return %c0_i32, %c0_i32_0 : i32, i32
  }
  func.func @transform_3(%arg0: i32, %arg1: i32) -> (i32, i32) {
    %c0_i32 = arith.constant 0 : i32
    %c0_i32_0 = arith.constant 0 : i32
    %c0_i32_1 = arith.constant 0 : i32
    return %c0_i32, %c0_i32_0 : i32, i32
  }
  func.func @transform_4(%arg0: i32, %arg1: i32) -> (i32, i32) {
    %c0_i32 = arith.constant 0 : i32
    %c0_i32_0 = arith.constant 0 : i32
    %c0_i32_1 = arith.constant 0 : i32
    return %c0_i32, %c0_i32_0 : i32, i32
  }
  func.func @transform_5(%arg0: i32, %arg1: i32) -> (i32, i32, i32, i32) {
    %c0_i32 = arith.constant 0 : i32
    %c0_i32_0 = arith.constant 0 : i32
    %c0_i32_1 = arith.constant 0 : i32
    %c0_i32_2 = arith.constant 0 : i32
    return %arg1, %c0_i32, %c0_i32_0, %c0_i32_1 : i32, i32, i32, i32
  }
  func.func @transform_6(%arg0: i32, %arg1: i32) -> (i32, i32, i32, i32) {
    %c0_i32 = arith.constant 0 : i32
    %c0_i32_0 = arith.constant 0 : i32
    %c0_i32_1 = arith.constant 0 : i32
    %c0_i32_2 = arith.constant 0 : i32
    return %arg1, %c0_i32, %c0_i32_0, %c0_i32_1 : i32, i32, i32, i32
  }
  func.func @transform_7(%arg0: i32, %arg1: i32) -> (i32, i32, i32, i32) {
    %c0_i32 = arith.constant 0 : i32
    %c0_i32_0 = arith.constant 0 : i32
    %c0_i32_1 = arith.constant 0 : i32
    %c0_i32_2 = arith.constant 0 : i32
    return %arg1, %c0_i32, %c0_i32_0, %c0_i32_1 : i32, i32, i32, i32
  }
  func.func @transform_8(%arg0: i32, %arg1: i32) -> (i32, i32, i32) {
    %c0_i32 = arith.constant 0 : i32
    %c0_i32_0 = arith.constant 0 : i32
    %c0_i32_1 = arith.constant 0 : i32
    return %arg1, %c0_i32, %c0_i32_0 : i32, i32, i32
  }
  func.func @transform_9(%arg0: i32, %arg1: i32) -> (i32, i32, i32) {
    %c0_i32 = arith.constant 0 : i32
    %c0_i32_0 = arith.constant 0 : i32
    %c0_i32_1 = arith.constant 0 : i32
    return %arg1, %c0_i32, %c0_i32_0 : i32, i32, i32
  }
  func.func @transform_10(%arg0: i32, %arg1: i32) -> (i32, i32, i32) {
    %c0_i32 = arith.constant 0 : i32
    %c0_i32_0 = arith.constant 0 : i32
    %c0_i32_1 = arith.constant 0 : i32
    return %arg1, %c0_i32, %c0_i32_0 : i32, i32, i32
  }
  func.func @transform_11(%arg0: i32, %arg1: i32) -> (i32, i32, i32) {
    %c0_i32 = arith.constant 0 : i32
    %c0_i32_0 = arith.constant 0 : i32
    %c0_i32_1 = arith.constant 0 : i32
    return %arg1, %c0_i32, %c0_i32_0 : i32, i32, i32
  }
  func.func @transform_12(%arg0: i32, %arg1: i32) -> (i32, i32, i32) {
    %c0_i32 = arith.constant 0 : i32
    %c0_i32_0 = arith.constant 0 : i32
    %c0_i32_1 = arith.constant 0 : i32
    return %arg1, %c0_i32, %c0_i32_0 : i32, i32, i32
  }
  func.func @transform_13(%arg0: i32, %arg1: i32) -> (i32, i32, i32) {
    %c0_i32 = arith.constant 0 : i32
    %c0_i32_0 = arith.constant 0 : i32
    %c0_i32_1 = arith.constant 0 : i32
    return %arg1, %c0_i32, %c0_i32_0 : i32, i32, i32
  }
  func.func @transform_14(%arg0: i32, %arg1: i32) -> (i32, i32, i32) {
    %c0_i32 = arith.constant 0 : i32
    %c0_i32_0 = arith.constant 0 : i32
    %c0_i32_1 = arith.constant 0 : i32
    return %arg1, %c0_i32, %c0_i32_0 : i32, i32, i32
  }
  func.func @transform_15(%arg0: i32, %arg1: i32) -> (i32, i32, i32) {
    %c0_i32 = arith.constant 0 : i32
    %c0_i32_0 = arith.constant 0 : i32
    %c0_i32_1 = arith.constant 0 : i32
    return %arg1, %c0_i32, %c0_i32_0 : i32, i32, i32
  }
  func.func @transform_16(%arg0: i32, %arg1: i32) -> (i32, i32, i32) {
    %c0_i32 = arith.constant 0 : i32
    %c0_i32_0 = arith.constant 0 : i32
    %c0_i32_1 = arith.constant 0 : i32
    return %arg1, %c0_i32, %c0_i32_0 : i32, i32, i32
  }
  func.func @transform_17(%arg0: i32, %arg1: i32) -> (i32, i32) {
    %c0_i32 = arith.constant 0 : i32
    %c0_i32_0 = arith.constant 0 : i32
    %c0_i32_1 = arith.constant 0 : i32
    return %c0_i32, %c0_i32_0 : i32, i32
  }
  func.func @transform_18(%arg0: i32, %arg1: i32) -> (i32, i32) {
    %c0_i32 = arith.constant 0 : i32
    %c0_i32_0 = arith.constant 0 : i32
    %c0_i32_1 = arith.constant 0 : i32
    return %c0_i32, %c0_i32_0 : i32, i32
  }
  func.func @transform_19(%arg0: i32, %arg1: i32) -> (i32, i32) {
    %c0_i32 = arith.constant 0 : i32
    %c0_i32_0 = arith.constant 0 : i32
    %c0_i32_1 = arith.constant 0 : i32
    return %c0_i32, %c0_i32_0 : i32, i32
  }
  func.func @transform_20(%arg0: i32, %arg1: i32) -> (i32, i32) {
    %c0_i32 = arith.constant 0 : i32
    %c0_i32_0 = arith.constant 0 : i32
    %c0_i32_1 = arith.constant 0 : i32
    return %c0_i32, %c0_i32_0 : i32, i32
  }
  func.func @transform_21(%arg0: i32, %arg1: i32) -> (i32, i32, i32) {
    %c0_i32 = arith.constant 0 : i32
    %c0_i32_0 = arith.constant 0 : i32
    %c0_i32_1 = arith.constant 0 : i32
    return %arg0, %c0_i32, %c0_i32_0 : i32, i32, i32
  }
}

</mosaic_0001>

<bundles_post_ra>
// kernel: tpu_custom_call.1
= control target key start
LH: loop header
LB: loop body
LE: loop exit
PB: predicated region body
PF: predicated region fallthrough
CT: control target
= control target key end

     0   :  { %s3476_s0 = inlined_call_operand.vmem [shape: f32[2,8,32], index: 0, kind: input, shape index: {}]   ;;  %s3477_s1 = inlined_call_operand.vmem [shape: f32[2,1,8], index: 1, kind: input, shape index: {}]   ;;  %s3478_s2 = inlined_call_operand.vmem [shape: f32[8,32], index: 2, kind: input, shape index: {}]   ;;  %s3479_s3 = inlined_call_operand.vmem [shape: f32[1,32], index: 3, kind: input, shape index: {}]   ;;  %s3480_s4 = inlined_call_operand.vmem [shape: f32[1,32], index: 4, kind: input, shape index: {}]   ;;  %s3481_s5 = inlined_call_operand.vmem [shape: bf16[2,4,32,24], index: 5, kind: input, shape index: {}]   ;;  %s3482_s6 = inlined_call_operand.vmem [shape: f32[2,4,1,24], index: 6, kind: input, shape index: {}]   ;;  %s3483_s7 = inlined_call_operand.vmem [shape: bf16[2,4,8,32], index: 7, kind: input, shape index: {}]   ;;  %s3484_s8 = inlined_call_operand.vmem [shape: f32[2,1,32], index: 8, kind: input, shape index: {}]   ;;  %s3485_s9 = inlined_call_operand.vmem [shape: f32[2,1,32], index: 9, kind: input, shape index: {}]   ;;  %s3486_s10 = inlined_call_operand.vmem [shape: f32[2,1,32], index: 10, kind: input, shape index: {}]   ;;  %s3487_s11 = inlined_call_operand.vmem [shape: bf16[2,32,128], index: 11, kind: input, shape index: {}]   ;;  %s3488_s12 = inlined_call_operand.vmem [shape: f32[2,1,128], index: 12, kind: input, shape index: {}]   ;;  %s3489_s13 = inlined_call_operand.vmem [shape: bf16[2,128,32], index: 13, kind: input, shape index: {}]   ;;  %s3490_s14 = inlined_call_operand.vmem [shape: f32[2,1,32], index: 14, kind: input, shape index: {}]   ;;  %s3491_s15 = inlined_call_operand.vmem [shape: f32[2,1,32], index: 15, kind: input, shape index: {}]   ;;  %s3492_s16 = inlined_call_operand.vmem [shape: f32[2,1,32], index: 16, kind: input, shape index: {}]   ;;  %s3493_s17 = inlined_call_operand.vmem [shape: bf16[32,32], index: 17, kind: input, shape index: {}]   ;;  %s3494_s18 = inlined_call_operand.vmem [shape: f32[1,32], index: 18, kind: input, shape index: {}]   ;;  %s3495_s19 = inlined_call_operand.vmem [shape: bf16[32,128], index: 19, kind: input, shape index: {}]   ;;  %s3496_s20 = inlined_call_operand.vmem [shape: f32[1,128], index: 20, kind: input, shape index: {}]   ;;  %s3497_s21 = inlined_call_operand.hbm [shape: f32[2,1,128], index: 21, kind: output, shape index: {}]  }
   0x1   :  { %3515 = sst [smem:[#allocation20_spill]] %s3476_s0 }
   0x2   :  { %3516 = sst [smem:[#allocation21_spill]] %s3477_s1 }
   0x3   :  { %3517 = sst [smem:[#allocation22_spill]] %s3478_s2 }
   0x4   :  { %3518 = sst [smem:[#allocation23_spill]] %s3479_s3 }
   0x5   :  { %3519 = sst [smem:[#allocation24_spill]] %s3480_s4 }
   0x6   :  { %3520 = sst [smem:[#allocation25_spill]] %s3481_s5 }
   0x7   :  { %3521 = sst [smem:[#allocation26_spill]] %s3482_s6 }
   0x8   :  { %3522 = sst [smem:[#allocation27_spill]] %s3483_s7 }
   0x9   :  { %3523 = sst [smem:[#allocation28_spill]] %s3487_s11 }
   0xa   :  { %3524 = sst [smem:[#allocation29_spill]] %s3492_s16 }
   0xb   :  { %3525 = sst [smem:[#allocation30_spill]] %s3493_s17 }
   0xc   :  { %3526 = sst [smem:[#allocation31_spill]] %s3494_s18 }
   0xd   :  { %3527 = sst [smem:[#allocation32_spill]] %s3495_s19 }
   0xe   :  { %3528 = sst [smem:[#allocation33_spill]] %s3496_s20 }
   0xf   :  { %3529 = sst [smem:[#allocation34_spill]] %s3497_s21 }
  0x10   :  { %26 = vsyncpa [#allocation4], 0 }
  0x11   :  { %28 = vsyncpa [#allocation4 + $0x1], 0  ;;  %s3034_s2 = smov 0   ;;  %s3036_s25 = smov 0  }
  0x12   :  { %s3038_s26 = smov 0   ;;  %s3040_s27 = smov 0  }
  0x13   :  { %s3042_s3 = smov 0   ;;  %s3044_s28 = smov 0  }
  0x14   :  { %s3046_s29 = smov 0   ;;  %s3048_s0 = smov 0  }
  0x15 LB: > { %3530 = sst [smem:[#allocation6_spill]] %s2887_s2  ;;  %s2415_s4 = sadd.s32 4294967295, %s2915_s0   ;;  %s2915_s0 = sphi %s3048_s0, %s34_s0   ;;  %s2911_s29 = sphi %s3046_s29, %s3588_s29   ;;  %s2907_s28 = sphi %s3044_s28, %s3584_s28   ;;  %s2903_s3 = sphi %s3042_s3, %s3583_s3   ;;  %s2899_s27 = sphi %s3040_s27, %s3582_s27   ;;  %s2895_s26 = sphi %s3038_s26, %s3581_s26   ;;  %s2891_s25 = sphi %s3036_s25, %s3587_s25   ;;  %s2887_s2 = sphi %s3034_s2, %s3586_s2  }
  0x16   : > { %3531 = sst [smem:[#allocation7_spill]] %s2895_s26  ;;  %s2416_s30 = sadd.s32 4294967294, %s2915_s0  }
  0x17   : > { %3532 = sst [smem:[#allocation8_spill]] %s2899_s27  ;;  %s43_s5 = sadd.s32 1, %s2907_s28 }
  0x18   : > { %3533 = sst [smem:[#allocation9_spill]] %s2903_s3  ;;  %p44_p0 = scmp.ge.s32.totalorder %s43_s5, 2 }
  0x19   : > { %3534 = sst [smem:[#allocation10_spill]] %s2907_s28  ;;  %s46_s22 = sadd.s32 1, %s2911_s29 }
  0x1a   : > { %3535 = sst [smem:[#allocation11_spill]] %s2911_s29  ;;  %p574_p1 = scmp.ne.s32.totalorder %s2895_s26, %s2891_s25 }
  0x1b   : > { %3536 = sst [smem:[#allocation12_spill]] %s2915_s0  ;;  %p575_p2 = scmp.eq.s32.totalorder %s2415_s4, 3 }
  0x1c   : > { %s3590_s5 = smov (%p44_p0, %s43_s5), 0  ;;  %s3592_s22 = smov (!%p44_p0, %s46_s22), %s2911_s29 }
  0x1d   : > { %3537 = sst [smem:[#allocation13_spill]] %s3590_s5  ;;  %p3083_p3 = por %p575_p2, %p574_p1 }
  0x1e   : > { %p580_p4 = scmp.ne.s32.totalorder %s2891_s25, %s2887_s2  ;;  %p48_p5 = scmp.ge.s32.totalorder %s3592_s22, 2 }
  0x1f   : > { %s3538_s23 = scalar_select %p3083_p3, 1, 0 }
  0x20   : > { %p581_p6 = scmp.eq.s32.totalorder %s2416_s30, 3  ;;  %p2419_p7 = scmp.ge.s32.totalorder %s2915_s0, 1 }
  0x21   : > { %3539 = sst [smem:[#allocation14_spill]] %s3538_s23  ;;  %p714_p8 = scmp.lt.s32.totalorder %s2915_s0, 5 }
  0x22   : > { %s3594_s22 = smov (%p48_p5, %s3592_s22), 0  ;;  %p3093_p9 = por %p581_p6, %p580_p4 }
  0x23   : > { %3540 = sst [smem:[#allocation15_spill]] %s3594_s22  ;;  %p715_p10 = pnand %p2419_p7, %p714_p8 }
  0x24   : > { %s3541_s1 = scalar_select %p3093_p9, 1, 0 }
  0x25   : > { %s561_s24 = ssub.s32 %s2911_s29, %s3594_s22  ;;  %s564_s4 = sadd.s32 1, %s2895_s26 }
  0x26   : > { %3542 = sst [smem:[#allocation16_spill]] %s3541_s1  ;;  %p562_p11 = scmp.eq.s32.totalorder %s561_s24, 0 }
  0x27   : > { %718 = sbr.rel (%p715_p10) target bundleno = 3277 (0xccd), region = 104 }
  0x28   : > { %s3101_s5 = scalar_select %p562_p11, %s2895_s26, %s564_s4  }
  0x2a   : > { %3543 = sst [smem:[#allocation17_spill]] %s3101_s5 }
  0x2e   : > { %p820_p12 = scmp.lt.s32.totalorder %s2903_s3, 1  ;;  %p827_p13 = scmp.lt.s32.totalorder %s2899_s27, 1 }
  0x2f   : > { %s3546_s2 = sld [smem:[#allocation20_spill]]  ;;  %s3547_s20 = sld [smem:[#allocation25_spill]] }
  0x30   : > { %s3107_s28 = scalar_select %p820_p12, %s2903_s3, 1 }
  0x31   : > { %s3110_s1 = scalar_select %p827_p13, %s2899_s27, 1 }
  0x32   : > { %3544 = sst [smem:[#allocation18_spill]] %s3107_s28  ;;  %s2420_s24 = sshll.u32 %s3107_s28, 3 }
  0x33   : > { %s2490_s21 = sshll.u32 %s3110_s1, 6  ;;  %s2423_s19 = sshll.u32 %s3110_s1, 2 }
  0x34   : > { %s3548_s6 = sld [smem:[#allocation26_spill]]  ;;  %s2491_s22 = sshll.u32 %s3110_s1, 4 }
  0x35   : > { %s823_s0 = scalar_lea.vmem %s3546_s2, %s2420_s24  ;;  %s3124_s18 = scalar_lea.vmem %s3547_s20, %s2490_s21 }
  0x36   : > { %s3549_s7 = sld [smem:[#allocation27_spill]]  ;;  %s3551_s11 = sld [smem:[#allocation28_spill]] }
  0x37   : > { %s3162_s5 = scalar_lea.vmem %s3489_s13, %s2490_s21  ;;  %s865_s20 = scalar_lea.vmem %s3490_s14, %s3110_s1 }
  0x38   : > { %s868_s17 = scalar_lea.vmem %s3491_s15, %s3110_s1  ;;  %s3552_s27 = sld [smem:[#allocation29_spill]] }
  0x39   : > { %s3554_s4 = sld [smem:[#allocation8_spill]] }
  0x3a   : > { %s3130_s16 = scalar_lea.vmem %s3548_s6, %s2423_s19 }
  0x3c   : > { %s3136_s26 = scalar_lea.vmem %s3549_s7, %s2491_s22  ;;  %s3153_s6 = scalar_lea.vmem %s3551_s11, %s2491_s22 }
  0x3d   : > { %3550 = sst [smem:[#allocation19_spill]] %s3136_s26  ;;  %s857_s7 = scalar_lea.vmem %s3488_s12, %s3110_s1 }
  0x3e   : > { %s871_s24 = scalar_lea.vmem %s3552_s27, %s3110_s1  ;;  %s3553_s11 = sand.u32 1, %s2891_s25  }
  0x3f   : > { %s3178_s30 = scalar_lea.vmem [#allocation3], %s3553_s11  ;;  %p2430_p0 = scmp.ne.s32.totalorder %s3554_s4, 0 }
  0x40   : > { %v877_v0 = vld [vmem:[%s823_s0] sm:$0xff] (!%p2430_p0)  ;;  %s3555_s2 = sld [smem:[#allocation22_spill]] (!%p2430_p0)  ;;  %vm882_vm0 = vcmask (!%p2430_p0), 261120   ;;  %s3556_s29 = sld [smem:[#allocation23_spill]] (!%p2430_p0) }
  0x41   : > { %876 = sbr.rel (%p2430_p0) target bundleno = 387 (0x183), region = 108  ;;  %s3557_s23 = sld [smem:[#allocation24_spill]] (!%p2430_p0) }
  0x46   : > { %v878_v1 = vld [vmem:[%s3555_s2] sm:$0xff] (!%p2430_p0) }
  0x47   : > { %v879_v2 = vadd.f32 (!%p2430_p0), %v878_v1, %v877_v0  ;;  %v2431_v13 = vld [vmem:[%s3556_s29] ss:$0 sm:$0xff] (!%p2430_p0) }
  0x48   : > { %v2432_v15 = vld [vmem:[%s3557_s23] ss:$0 sm:$0xff] }
  0x49   : > { %v883_v3 = vsel %vm882_vm0, %v879_v2, 0.0 }
  0x4a   : > { %884 = vadd.xlane.f32.xlu0 %v883_v3 }
  0xd7   : > { %v885_v4 = vpop.xlane.xlu0 %884 }
  0xd8   : > { %v887_v5 = vmul.f32 0.03125, %v885_v4 }
  0xda   : > { %v888_v6 = vsub.f32 %v879_v2, %v887_v5 }
  0xdc   : > { %v889_v7 = vmul.f32 %v888_v6, %v888_v6 }
  0xde   : > { %v890_v8 = vsel %vm882_vm0, %v889_v7, 0.0 }
  0xdf   : > { %891 = vadd.xlane.f32.xlu0 %v890_v8 }
 0x16c   : > { %v892_v9 = vpop.xlane.xlu0 %891 }
 0x16d   : > { %v893_v10 = vmul.f32 0.03125, %v892_v9 }
 0x16f   : > { %v894_v11 = vadd.f32 1e-12, %v893_v10 }
 0x171   : > { %2773 = vrsqrt.f32 %v894_v11 }
 0x17b   : > { %v2774_v12 = vpop.eup %2773 }
 0x17c   : > { %v896_v14 = vmul.f32 %v2774_v12, %v888_v6 }
 0x17e   : > { %v903_v16 = vmul.f32 %v2431_v13, %v896_v14 }
 0x180   : > { %v910_v17 = vadd.f32 %v2432_v15, %v903_v16 }
 0x182   : > { %911 = vst.msk [vmem:[#allocation2] sm:$0xff] %vm882_vm0, %v910_v17 }
 0x183 PF: > { %v2775_v18 = vld [vmem:[%s3124_s18] sm:$0xff]   ;;  %v2917_v19 = vmov 0.0   ;;  %v2776_v20 = vld [vmem:[%s3124_s18 + $0x8] sm:$0xff]   ;;  %vm2918_vm1 = vmmov 0   ;;  %v2777_v23 = vld [vmem:[%s3124_s18 + $0x10] sm:$0xff]   ;;  %vm970_vm2 = vcmask 261120   ;;  %s3562_s0 = scalar_lea.vmem %s3484_s8, %s3110_s1  ;;  %s3563_s28 = scalar_lea.vmem %s3485_s9, %s3110_s1 }
 0x184   : > { %2548 = vmatprep.subr.bf16.mxu0 %v2917_v19  ;;  %2572 = vmatprep.subr.bf16.mxu1 %v2917_v19  ;;  %v2780_v24 = vld [vmem:[%s3124_s18 + $0x30] sm:$0xff]   ;;  %v2778_v25 = vld [vmem:[%s3124_s18 + $0x18] sm:$0xff]   ;;  %v2779_v27 = vld [vmem:[%s3124_s18 + $0x20] sm:$0xff]   ;;  %vm1184_vm3 = vcmask 64512   ;;  %s3559_s27 = sld [smem:[#allocation21_spill]]  ;;  %s2920_s21 = smov 112  }
 0x185   : > { %2549 = vmatpush3.bf16.msra.mxu0 %v2775_v18  ;;  %2552 = vmatprep.mubr.msk.bf16.mxu0 %vm2918_vm1, %v2917_v19  ;;  %v2782_v26 = vld [vmem:[%s3124_s18 + $0x38] sm:$0xff]   ;;  %v2781_v28 = vld [vmem:[%s3124_s18 + $0x28] sm:$0xff]   ;;  %v2433_v29 = vld [vmem:[%s3130_s16] ss:$0 sm:$0xff]  ;;  %s2919_s18 = smov 120   ;;  %vm1431_vm4 = vcmask 1043456  }
 0x186   : > { %2550 = vmatprep.subr.bf16.mxu0 %v2917_v19  ;;  %2576 = vmatprep.mubr.msk.bf16.mxu1 %vm2918_vm1, %v2917_v19  ;;  %v2434_v36 = vld [vmem:[%s3130_s16 + $0x1] ss:$0 sm:$0xff]  ;;  %v2435_v47 = vld [vmem:[%s3130_s16 + $0x2] ss:$0 sm:$0xff]  ;;  %v2436_v48 = vld [vmem:[%s3130_s16 + $0x3] ss:$0 sm:$0xff] }
 0x187   : > { %2573 = vmatpush3.bf16.msra.mxu1 %v2780_v24  ;;  %s3558_s16 = sld [smem:[#allocation18_spill]]  ;;  %s3561_s26 = sld [smem:[#allocation19_spill]] }
 0x188   : > { %2574 = vmatprep.subr.bf16.mxu1 %v2917_v19 }
 0x189   : > { %v3199_v21 = vld [vmem:[#allocation2] sm:$0xff]  ;;  %2551 = vmatpush3.bf16.msra.mxu0 %v2776_v20 }
 0x18a   : > { %v913_v22 = vpack.c.bf16 %v3199_v21, %v3199_v21  ;;  %2556 = vmatprep.subr.bf16.mxu0 %v2917_v19 }
 0x18b   : > { %2575 = vmatpush3.bf16.msra.mxu1 %v2782_v26 }
 0x18c   : > { %2553 = vmatmul.mubr.msk.bf16.vlgmr.msra.gmra.mrb[0].mxu0 %vm970_vm2, %v913_v22  ;;  %2586 = vmatprep.subr.bf16.mxu1 %v2917_v19 }
 0x18d   : > { %2557 = vmatpush3.bf16.msra.mxu0 %v2777_v23  ;;  %2560 = vmatprep.mubr.msk.bf16.mxu0 %vm2918_vm1, %v2917_v19  ;;  %s3560_s4 = scalar_lea.vmem %s3559_s27, %s3558_s16  ;;  %s3564_s16 = scalar_lea.vmem %s3486_s10, %s3110_s1 }
 0x18e   : > { %2558 = vmatprep.subr.bf16.mxu0 %v2917_v19  ;;  %2577 = vmatmul.mubr.msk.bf16.vlgmr.msra.gmra.mrb[0].mxu1 %vm970_vm2, %v913_v22  ;;  %v2449_v1 = vld [vmem:[%s3560_s4] ss:$0 sm:$0xff] }
 0x18f   : > { %2588 = vmatprep.mubr.msk.bf16.mxu1 %vm2918_vm1, %v2917_v19 }
 0x191   : > { %2559 = vmatpush3.bf16.msra.mxu0 %v2778_v25 }
 0x192   : > { %2564 = vmatprep.subr.bf16.mxu0 %v2917_v19 }
 0x194   : > { %2561 = vmatmul.mubr.msk.bf16.vlgmr.msra.gmra.mrb[4].mxu0 %vm970_vm2, %v913_v22 }
 0x195   : > { %2565 = vmatpush3.bf16.msra.mxu0 %v2779_v27  ;;  %2568 = vmatprep.mubr.msk.bf16.mxu0 %vm2918_vm1, %v2917_v19 }
 0x196   : > { %2566 = vmatprep.subr.bf16.mxu0 %v2917_v19 }
 0x199   : > { %2567 = vmatpush3.bf16.msra.mxu0 %v2781_v28 }
 0x19a   : > { %2580 = vmatprep.subr.bf16.mxu0 %v2917_v19 }
 0x19c   : > { %2569 = vmatmul.mubr.msk.bf16.vlgmr.msra.gmra.mrb[8].mxu0 %vm970_vm2, %v913_v22 }
 0x19d   : > { %2582 = vmatprep.mubr.msk.bf16.mxu0 %vm2918_vm1, %v2917_v19 }
 0x25f   : > { %v1008_v30 = vpop.f32.mrb[0].mxu0 }
 0x260   : > { %v1009_v31 = vadd.f32 %v2433_v29, %v1008_v30  ;;  %v2554_v32 = vpop.f32.mrb[1].mxu0 }
 0x261   : > { %v1011_v33 = vpop.f32.mrb[2].mxu0  ;;  %v1164_v37 = vpop.f32.mrb[0].mxu1 }
 0x262   : > { %v3232_v34 = vpack.c.bf16 %v1009_v31, %v1009_v31  ;;  %v2555_v35 = vpop.f32.mrb[3].mxu0  ;;  %v2578_v38 = vpop.f32.mrb[1].mxu1  ;;  %v1165_v52 = vadd.f32 %v2436_v48, %v1164_v37 }
 0x263   : > { %v1167_v40 = vpop.f32.mrb[2].mxu1 }
 0x264   : > { %1182 = vrot.lane.b32.xlu0 %v3232_v34, %s2919_s18  ;;  %v2579_v43 = vpop.f32.mrb[3].mxu1  ;;  %v3243_v56 = vpack.c.bf16 %v1165_v52, %v1165_v52 }
 0x267   : > { %v1060_v39 = vpop.f32.mrb[4].mxu0 }
 0x268   : > { %v1061_v41 = vadd.f32 %v2434_v36, %v1060_v39  ;;  %v2562_v42 = vpop.f32.mrb[5].mxu0 }
 0x269   : > { %v1063_v44 = vpop.f32.mrb[6].mxu0 }
 0x26a   : > { %v3236_v45 = vpack.c.bf16 %v1061_v41, %v1061_v41  ;;  %v2563_v46 = vpop.f32.mrb[7].mxu0 }
 0x26c   : > { %1232 = vrot.lane.b32.xlu0 %v3236_v45, %s2919_s18 }
 0x26f   : > { %v1112_v49 = vpop.f32.mrb[8].mxu0 }
 0x270   : > { %v1113_v50 = vadd.f32 %v2435_v47, %v1112_v49  ;;  %v2570_v51 = vpop.f32.mrb[9].mxu0 }
 0x271   : > { %v1115_v53 = vpop.f32.mrb[10].mxu0 }
 0x272   : > { %v3241_v54 = vpack.c.bf16 %v1113_v50, %v1113_v50  ;;  %v2571_v55 = vpop.f32.mrb[11].mxu0 }
 0x274   : > { %1281 = vrot.lane.b32.xlu1 %v3241_v54, %s2919_s18 }
 0x278   : > { %1330 = vrot.lane.b32.xlu1 %v3243_v56, %s2919_s18 }
 0x2d6   : > { %v1183_v57 = vpop.permute.xlu0 %1182 }
 0x2d7   : > { %v1189_v58 = vsel %vm1184_vm3, %v1183_v57, 0 }
 0x2d8   : > { %2581 = vmatpush3.bf16.xpose.msra.mxu0 %v1189_v58 }
 0x2d9   : > { %2592 = vmatprep.subr.bf16.mxu0 %v2917_v19 }
 0x2de   : > { %v1233_v59 = vpop.permute.xlu0 %1232 }
 0x2df   : > { %v1238_v60 = vsel %vm1184_vm3, %v1233_v59, 0  ;;  %2583 = vmatmul.mubr.msk.bf16.vlgmr.msra.gmra.mrb[12].mxu0 %vm1184_vm3, %v3232_v34 }
 0x2e0   : > { %2587 = vmatpush3.bf16.xpose.msra.mxu1 %v1238_v60  ;;  %2594 = vmatprep.mubr.msk.bf16.mxu0 %vm2918_vm1, %v2917_v19 }
 0x2e1   : > { %2598 = vmatprep.subr.bf16.mxu1 %v2917_v19 }
 0x2e6   : > { %v1282_v61 = vpop.permute.xlu1 %1281 }
 0x2e7   : > { %v1287_v62 = vsel %vm1184_vm3, %v1282_v61, 0  ;;  %2589 = vmatmul.mubr.msk.bf16.vlgmr.msra.gmra.mrb[4].mxu1 %vm1184_vm3, %v3236_v45 }
 0x2e8   : > { %2593 = vmatpush3.bf16.xpose.msra.mxu0 %v1287_v62  ;;  %2600 = vmatprep.mubr.msk.bf16.mxu1 %vm2918_vm1, %v2917_v19 }
 0x2e9   : > { %2604 = vmatprep.subr.bf16.mxu0 %v2917_v19 }
 0x2ea   : > { %v1331_v63 = vpop.permute.xlu1 %1330 }
 0x2eb   : > { %v1336_v0 = vsel %vm1184_vm3, %v1331_v63, 0 }
 0x2ec   : > { %2599 = vmatpush3.bf16.xpose.msra.mxu1 %v1336_v0 }
 0x2ed   : > { %2610 = vmatprep.subr.bf16.mxu1 %v2917_v19 }
 0x2ef   : > { %2595 = vmatmul.mubr.msk.bf16.vlgmr.msra.gmra.mrb[16].mxu0 %vm1184_vm3, %v3241_v54 }
 0x2f0   : > { %2606 = vmatprep.mubr.msk.bf16.mxu0 %vm2918_vm1, %v2917_v19 }
 0x2f3   : > { %2601 = vmatmul.mubr.msk.bf16.vlgmr.msra.gmra.mrb[8].mxu1 %vm1184_vm3, %v3243_v56 }
 0x2f4   : > { %2612 = vmatprep.mubr.msk.bf16.mxu1 %vm2918_vm1, %v2917_v19 }
 0x3b2   : > { %v1225_v2 = vpop.f32.mrb[12].mxu0 }
 0x3b3   : > { %v1226_v3 = vadd.f32 %v2449_v1, %v1225_v2  ;;  %v2584_v4 = vpop.f32.mrb[13].mxu0 }
 0x3b4   : > { %v1228_v5 = vpop.f32.mrb[14].mxu0 }
 0x3b5   : > { %v2585_v6 = vpop.f32.mrb[15].mxu0  ;;  %v1378_v7 = vsel %vm1184_vm3, %v1226_v3, -inf }
 0x3b6   : > { %1379 = vmax.xlane.f32.xlu0 %v1378_v7 }
 0x3ba   : > { %v1274_v8 = vpop.f32.mrb[4].mxu1 }
 0x3bb   : > { %v1275_v9 = vadd.f32 %v2449_v1, %v1274_v8  ;;  %v2590_v10 = vpop.f32.mrb[5].mxu1  ;;  %v1623_v8 = vld [vmem:[%s3561_s26] sm:$0xf] }
 0x3bc   : > { %v1277_v11 = vpop.f32.mrb[6].mxu1  ;;  %v1624_v10 = vld [vmem:[%s3561_s26 + $0x4] sm:$0xf] }
 0x3bd   : > { %v2591_v12 = vpop.f32.mrb[7].mxu1  ;;  %v1381_v13 = vsel %vm1184_vm3, %v1275_v9, -inf  ;;  %v1677_v11 = vsel %vm1431_vm4, %v1624_v10, 0 }
 0x3be   : > { %1382 = vmax.xlane.f32.xlu1 %v1381_v13  ;;  %v1625_v12 = vld [vmem:[%s3561_s26 + $0x8] sm:$0xf] }
 0x3c2   : > { %v1323_v14 = vpop.f32.mrb[16].mxu0 }
 0x3c3   : > { %v1324_v15 = vadd.f32 %v2449_v1, %v1323_v14  ;;  %v2596_v16 = vpop.f32.mrb[17].mxu0 }
 0x3c4   : > { %v1326_v17 = vpop.f32.mrb[18].mxu0  ;;  %v1723_v16 = vsel %vm1431_vm4, %v1625_v12, 0 }
 0x3c5   : > { %v2597_v18 = vpop.f32.mrb[19].mxu0  ;;  %v1384_v20 = vsel %vm1184_vm3, %v1324_v15, -inf }
 0x3c6   : > { %v1372_v22 = vpop.f32.mrb[8].mxu1  ;;  %1385 = vmax.xlane.f32.xlu0 %v1384_v20  ;;  %v1626_v20 = vld [vmem:[%s3561_s26 + $0xc] sm:$0xf]  ;;  %s3566_s26 = sld [smem:[#allocation8_spill]] }
 0x3c7   : > { %v1373_v23 = vadd.f32 %v2449_v1, %v1372_v22  ;;  %v2602_v24 = vpop.f32.mrb[9].mxu1 }
 0x3c8   : > { %v1375_v25 = vpop.f32.mrb[10].mxu1 }
 0x3c9   : > { %v2603_v26 = vpop.f32.mrb[11].mxu1  ;;  %v1387_v27 = vsel %vm1184_vm3, %v1373_v23, -inf  ;;  %v1769_v25 = vsel %vm1431_vm4, %v1626_v20, 0  ;;  %v2787_v20 = vld [vmem:[%s3162_s5 + $0x10] sm:$0xff]  }
 0x3ca   : > { %1388 = vmax.xlane.f32.xlu0 %v1387_v27 }
 0x3cc   : > { %p2480_p1 = scmp.ne.s32.totalorder %s3566_s26, 1 }
 0x3cd   : > { %vm2922_vm5 = vmmov (!%p2480_p1), 0   ;;  %s3569_s3 = sld [smem:[#allocation32_spill]] (!%p2480_p1)  ;;  %s3572_s22 = sld [smem:[#allocation33_spill]] (!%p2480_p1) }
 0x3cf   : > { %1426 = vrot.lane.b32.xlu1 %v3232_v34, %s2920_s21 }
 0x3d3   : > { %s3570_s18 = smov (!%p2480_p1), %s3569_s3 }
 0x443   : > { %v1380_v28 = vpop.xlane.xlu0 %1379 }
 0x444   : > { %v1390_v29 = vsub.f32 %v1226_v3, %v1380_v28 }
 0x446   : > { %v1394_v30 = vmul.f32 1.442695, %v1390_v29 }
 0x448   : > { %2793 = vpow2.f32 %v1394_v30 }
 0x44b   : > { %v1383_v31 = vpop.xlane.xlu1 %1382 }
 0x44c   : > { %v1391_v32 = vsub.f32 %v1275_v9, %v1383_v31  ;;  %v1631_v9 = vsel %vm1431_vm4, %v1623_v8, 0 }
 0x44e   : > { %v1396_v33 = vmul.f32 1.442695, %v1391_v32 }
 0x44f   : > { %v1427_v35 = vpop.permute.xlu1 %1426 }
 0x450   : > { %2795 = vpow2.f32 %v1396_v33  ;;  %v1433_v36 = vsel %vm1431_vm4, %v1427_v35, 0 }
 0x451   : > { %2605 = vmatpush3.bf16.msra.mxu0 %v1433_v36 }
 0x452   : > { %v2794_v37 = vpop.eup %2793  ;;  %2616 = vmatprep.subr.bf16.mxu0 %v2917_v19 }
 0x453   : > { %v1386_v38 = vpop.xlane.xlu0 %1385  ;;  %v1402_v39 = vsel %vm1184_vm3, %v2794_v37, 0.0 }
 0x454   : > { %v1392_v34 = vsub.f32 %v1324_v15, %v1386_v38  ;;  %1403 = vadd.xlane.f32.xlu1 %v1402_v39 }
 0x456   : > { %v1398_v40 = vmul.f32 1.442695, %v1392_v34 }
 0x457   : > { %v1389_v41 = vpop.xlane.xlu0 %1388 }
 0x458   : > { %2797 = vpow2.f32 %v1398_v40  ;;  %v1393_v42 = vsub.f32 %v1373_v23, %v1389_v41 }
 0x45a   : > { %v2796_v43 = vpop.eup %2795  ;;  %v1400_v44 = vmul.f32 1.442695, %v1393_v42 }
 0x45b   : > { %v1405_v46 = vsel %vm1184_vm3, %v2796_v43, 0.0 }
 0x45c   : > { %2799 = vpow2.f32 %v1400_v44  ;;  %1406 = vadd.xlane.f32.xlu0 %v1405_v46 }
 0x462   : > { %v2798_v47 = vpop.eup %2797 }
 0x463   : > { %v1408_v48 = vsel %vm1184_vm3, %v2798_v47, 0.0 }
 0x464   : > { %1409 = vadd.xlane.f32.xlu1 %v1408_v48 }
 0x466   : > { %v2800_v49 = vpop.eup %2799 }
 0x467   : > { %v1411_v50 = vsel %vm1184_vm3, %v2800_v49, 0.0 }
 0x468   : > { %1412 = vadd.xlane.f32.xlu0 %v1411_v50 }
 0x475   : > { %1523 = vrot.lane.b32.xlu1 %v3241_v54, %s2920_s21 }
 0x479   : > { %1571 = vrot.lane.b32.xlu1 %v3243_v56, %s2920_s21 }
 0x47e   : > { %1475 = vrot.lane.b32.xlu0 %v3236_v45, %s2920_s21 }
 0x4e1   : > { %v1404_v51 = vpop.xlane.xlu1 %1403 }
 0x4e2   : > { %2801 = vrcp.f32 %v1404_v51 }
 0x4e9   : > { %v1407_v52 = vpop.xlane.xlu0 %1406 }
 0x4ea   : > { %2803 = vrcp.f32 %v1407_v52 }
 0x4ec   : > { %v2802_v53 = vpop.eup %2801 }
 0x4ed   : > { %v1418_v55 = vmul.f32 %v2802_v53, %v2794_v37 }
 0x4ef   : > { %v1422_v57 = vpack.c.bf16 %v1418_v55, %v1418_v55 }
 0x4f1   : > { %2607 = vmatmul.mubr.msk.bf16.vlgmr.msra.gmra.mrb[20].mxu0 %vm1184_vm3, %v1422_v57  ;;  %v1410_v58 = vpop.xlane.xlu1 %1409 }
 0x4f2   : > { %2805 = vrcp.f32 %v1410_v58  ;;  %2618 = vmatprep.mubr.msk.bf16.mxu0 %vm2918_vm1, %v2917_v19 }
 0x4f4   : > { %v2804_v54 = vpop.eup %2803 }
 0x4f5   : > { %v1524_v59 = vpop.permute.xlu1 %1523  ;;  %v1413_v56 = vpop.xlane.xlu0 %1412  ;;  %v1419_v45 = vmul.f32 %v2804_v54, %v2796_v43 }
 0x4f6   : > { %v1529_v60 = vsel %vm1431_vm4, %v1524_v59, 0  ;;  %2807 = vrcp.f32 %v1413_v56  ;;  %v2462_v59 = vld [vmem:[%s3562_s0] ss:$0 sm:$0xff]  ;;  %s3567_s0 = sld [smem:[#allocation30_spill]] (!%p2480_p1) }
 0x4f7   : > { %2617 = vmatpush3.bf16.msra.mxu0 %v1529_v60  ;;  %v1423_v1 = vpack.c.bf16 %v1419_v45, %v1419_v45 }
 0x4f8   : > { %2628 = vmatprep.subr.bf16.mxu0 %v2917_v19 }
 0x4f9   : > { %v1476_v61 = vpop.permute.xlu0 %1475  ;;  %v1572_v63 = vpop.permute.xlu1 %1571 }
 0x4fa   : > { %v1481_v62 = vsel %vm1431_vm4, %v1476_v61, 0  ;;  %v1577_v3 = vsel %vm1431_vm4, %v1572_v63, 0 }
 0x4fb   : > { %2611 = vmatpush3.bf16.msra.mxu1 %v1481_v62 }
 0x4fc   : > { %v2806_v0 = vpop.eup %2805  ;;  %2622 = vmatprep.subr.bf16.mxu1 %v2917_v19  ;;  %s3568_s23 = smov (!%p2480_p1), %s3567_s0 }
 0x4fd   : > { %v1420_v2 = vmul.f32 %v2806_v0, %v2798_v47 }
 0x4fe   : > { %2613 = vmatmul.mubr.msk.bf16.vlgmr.msra.gmra.mrb[12].mxu1 %vm1184_vm3, %v1423_v1 }
 0x4ff   : > { %2623 = vmatpush3.bf16.msra.mxu1 %v1577_v3  ;;  %v1424_v4 = vpack.c.bf16 %v1420_v2, %v1420_v2  ;;  %2624 = vmatprep.mubr.msk.bf16.mxu1 %vm2918_vm1, %v2917_v19 }
 0x500   : > { %v2808_v5 = vpop.eup %2807  ;;  %2634 = vmatprep.subr.bf16.mxu1 %v2917_v19 }
 0x501   : > { %v1421_v6 = vmul.f32 %v2808_v5, %v2800_v49  ;;  %2619 = vmatmul.mubr.msk.bf16.vlgmr.msra.gmra.mrb[24].mxu0 %vm1184_vm3, %v1424_v4 }
 0x502   : > { %2630 = vmatprep.mubr.msk.bf16.mxu0 %vm2918_vm1, %v2917_v19  ;;  %2629 = vmatpush3.bf16.msra.mxu0 %v1631_v9 }
 0x503   : > { %v1425_v7 = vpack.c.bf16 %v1421_v6, %v1421_v6  ;;  %2640 = vmatprep.subr.bf16.mxu0 %v2917_v19  ;;  %v2783_v6 = vld [vmem:[%s3153_s6] sm:$0xff]  }
 0x506   : > { %2625 = vmatmul.mubr.msk.bf16.vlgmr.msra.gmra.mrb[16].mxu1 %vm1184_vm3, %v1425_v7  ;;  %v2784_v7 = vld [vmem:[%s3153_s6 + $0x8] sm:$0xff]  }
 0x507   : > { %2636 = vmatprep.mubr.msk.bf16.mxu1 %vm2918_vm1, %v2917_v19  ;;  %2635 = vmatpush3.bf16.msra.mxu1 %v1677_v11  ;;  %v2463_v11 = vld [vmem:[%s3563_s28] ss:$0 sm:$0xff] }
 0x508   : > { %2646 = vmatprep.subr.bf16.mxu1 %v2917_v19 }
 0x5c4   : > { %v1469_v13 = vpop.f32.mrb[20].mxu0 }
 0x5c5   : > { %v1619_v14 = vpack.c.bf16 %v1469_v13, %v1469_v13  ;;  %v2608_v15 = vpop.f32.mrb[21].mxu0  ;;  %v2464_v13 = vld [vmem:[%s3564_s16] ss:$0 sm:$0xff] }
 0x5c6   : > { %v1472_v17 = vpop.f32.mrb[22].mxu0 }
 0x5c7   : > { %v2609_v18 = vpop.f32.mrb[23].mxu0  ;;  %2631 = vmatmul.mubr.msk.bf16.vlgmr.msra.gmra.mrb[28].mxu0 %vm1184_vm3, %v1619_v14  ;;  %v2785_v17 = vld [vmem:[%s3162_s5] sm:$0xff]  }
 0x5c8   : > { %2641 = vmatpush3.bf16.msra.mxu0 %v1723_v16  ;;  %2642 = vmatprep.mubr.msk.bf16.mxu0 %vm2918_vm1, %v2917_v19  ;;  %v2786_v18 = vld [vmem:[%s3162_s5 + $0x8] sm:$0xff]  }
 0x5c9   : > { %2652 = vmatprep.subr.bf16.mxu0 %v2917_v19 }
 0x5d1   : > { %v1517_v22 = vpop.f32.mrb[12].mxu1 }
 0x5d2   : > { %v1620_v23 = vpack.c.bf16 %v1517_v22, %v1517_v22  ;;  %v2614_v24 = vpop.f32.mrb[13].mxu1  ;;  %v2788_v22 = vld [vmem:[%s3162_s5 + $0x18] sm:$0xff]  }
 0x5d3   : > { %v1520_v26 = vpop.f32.mrb[14].mxu1  ;;  %v2790_v24 = vld [vmem:[%s3162_s5 + $0x28] sm:$0xff]  }
 0x5d4   : > { %v2615_v27 = vpop.f32.mrb[15].mxu1  ;;  %v1565_v28 = vpop.f32.mrb[24].mxu0  ;;  %2637 = vmatmul.mubr.msk.bf16.vlgmr.msra.gmra.mrb[20].mxu1 %vm1184_vm3, %v1620_v23  ;;  %v2789_v23 = vld [vmem:[%s3162_s5 + $0x20] sm:$0xff]   ;;  %v2792_v26 = vld [vmem:[%s3162_s5 + $0x38] sm:$0xff]  }
 0x5d5   : > { %v1621_v29 = vpack.c.bf16 %v1565_v28, %v1565_v28  ;;  %v2620_v30 = vpop.f32.mrb[25].mxu0  ;;  %2647 = vmatpush3.bf16.msra.mxu1 %v1769_v25  ;;  %2648 = vmatprep.mubr.msk.bf16.mxu1 %vm2918_vm1, %v2917_v19  ;;  %v2791_v25 = vld [vmem:[%s3162_s5 + $0x30] sm:$0xff]   ;;  %v2465_v27 = vld [vmem:[%s857_s7] ss:$0 sm:$0xff]  ;;  %s3571_s5 = sld [smem:[#allocation31_spill]] (!%p2480_p1) }
 0x5d6   : > { %v1568_v31 = vpop.f32.mrb[26].mxu0  ;;  %2660 = vmatprep.subr.bf16.mxu1 %v2917_v19 }
 0x5d7   : > { %v2621_v32 = vpop.f32.mrb[27].mxu0  ;;  %2643 = vmatmul.mubr.msk.bf16.vlgmr.msra.gmra.mrb[32].mxu0 %vm1184_vm3, %v1621_v29 }
 0x5d8   : > { %2656 = vmatprep.mubr.msk.bf16.mxu0 %vm2918_vm1, %v2917_v19  ;;  %2653 = vmatpush3.bf16.msra.mxu0 %v2783_v6 }
 0x5d9   : > { %v1613_v33 = vpop.f32.mrb[16].mxu1  ;;  %2654 = vmatprep.subr.bf16.mxu0 %v2917_v19 }
 0x5da   : > { %v1622_v35 = vpack.c.bf16 %v1613_v33, %v1613_v33  ;;  %v2626_v36 = vpop.f32.mrb[17].mxu1 }
 0x5db   : > { %v1616_v37 = vpop.f32.mrb[18].mxu1  ;;  %v2085_v6 = vld [vmem:[%s3571_s5] sm:$0x1] (!%p2480_p1) }
 0x5dc   : > { %v2627_v38 = vpop.f32.mrb[19].mxu1  ;;  %2649 = vmatmul.mubr.msk.bf16.vlgmr.msra.gmra.mrb[24].mxu1 %vm1184_vm3, %v1622_v35  ;;  %2655 = vmatpush3.bf16.msra.mxu0 %v2784_v7 }
 0x5dd   : > { %2676 = vmatprep.mubr.msk.bf16.mxu1 %vm2918_vm1, %v2917_v19  ;;  %2661 = vmatpush3.bf16.msra.mxu1 %v2785_v17 }
 0x5de   : > { %2662 = vmatprep.subr.bf16.mxu1 %v2917_v19 }
 0x5e1   : > { %2663 = vmatpush3.bf16.msra.mxu1 %v2786_v18 }
 0x5e2   : > { %2664 = vmatprep.subr.bf16.mxu1 %v2917_v19 }
 0x5e5   : > { %2665 = vmatpush3.bf16.msra.mxu1 %v2787_v20 }
 0x5e6   : > { %2666 = vmatprep.subr.bf16.mxu1 %v2917_v19 }
 0x5e9   : > { %2667 = vmatpush3.bf16.msra.mxu1 %v2788_v22 }
 0x5ea   : > { %2668 = vmatprep.subr.bf16.mxu1 %v2917_v19 }
 0x5ed   : > { %2669 = vmatpush3.bf16.msra.mxu1 %v2789_v23 }
 0x5ee   : > { %2670 = vmatprep.subr.bf16.mxu1 %v2917_v19 }
 0x5f1   : > { %2671 = vmatpush3.bf16.msra.mxu1 %v2790_v24 }
 0x5f2   : > { %2672 = vmatprep.subr.bf16.mxu1 %v2917_v19 }
 0x5f5   : > { %2673 = vmatpush3.bf16.msra.mxu1 %v2791_v25 }
 0x5f6   : > { %2674 = vmatprep.subr.bf16.mxu1 %v2917_v19 }
 0x5f9   : > { %2675 = vmatpush3.bf16.msra.mxu1 %v2792_v26 }
 0x69a   : > { %v1667_v39 = vpop.f32.mrb[28].mxu0 }
 0x69b   : > { %v2632_v34 = vpop.f32.mrb[29].mxu0  ;;  %v1811_v43 = vsel %vm970_vm2, %v1667_v39, 0.0 }
 0x69c   : > { %v1670_v40 = vpop.f32.mrb[30].mxu0 }
 0x69d   : > { %v2633_v41 = vpop.f32.mrb[31].mxu0 }
 0x6a7   : > { %v1713_v42 = vpop.f32.mrb[20].mxu1 }
 0x6a8   : > { %v1812_v44 = vsel %vm970_vm2, %v1713_v42, 0.0  ;;  %v2638_v46 = vpop.f32.mrb[21].mxu1  ;;  %v2469_v42 = vld [vmem:[%s865_s20] ss:$0 sm:$0xff] }
 0x6a9   : > { %v1813_v47 = vadd.f32 %v1812_v44, %v1811_v43  ;;  %v1716_v48 = vpop.f32.mrb[22].mxu1 }
 0x6aa   : > { %v2639_v49 = vpop.f32.mrb[23].mxu1  ;;  %v1759_v50 = vpop.f32.mrb[32].mxu0 }
 0x6ab   : > { %v1814_v51 = vsel %vm970_vm2, %v1759_v50, 0.0  ;;  %v2644_v52 = vpop.f32.mrb[33].mxu0 }
 0x6ac   : > { %v1815_v53 = vadd.f32 %v1814_v51, %v1813_v47  ;;  %v1762_v55 = vpop.f32.mrb[34].mxu0 }
 0x6ad   : > { %v2645_v57 = vpop.f32.mrb[35].mxu0 }
 0x6af   : > { %v1805_v58 = vpop.f32.mrb[24].mxu1 }
 0x6b0   : > { %v1816_v54 = vsel %vm970_vm2, %v1805_v58, 0.0  ;;  %v2650_v56 = vpop.f32.mrb[25].mxu1 }
 0x6b1   : > { %v1817_v60 = vadd.f32 %v1816_v54, %v1815_v53  ;;  %v1808_v45 = vpop.f32.mrb[26].mxu1 }
 0x6b2   : > { %v2651_v61 = vpop.f32.mrb[27].mxu1 }
 0x6b3   : > { %v1825_v62 = vadd.f32 %v2462_v59, %v1817_v60  ;;  %v2478_v60 = vld [vmem:[%s868_s17] ss:$0 sm:$0xff] }
 0x6b4   : > { %v2479_v61 = vld [vmem:[%s871_s24] ss:$0 sm:$0xff] }
 0x6b5   : > { %v1826_v63 = vadd.f32 %v1825_v62, %v3199_v21 }
 0x6b7   : > { %v1829_v0 = vsel %vm970_vm2, %v1826_v63, 0.0 }
 0x6b8   : > { %1830 = vadd.xlane.f32.xlu0 %v1829_v0  ;;  %v2815_v0 = vld [vmem:[%s3567_s0] sm:$0xff] (!%p2480_p1)  }
 0x745   : > { %v1831_v1 = vpop.xlane.xlu0 %1830 }
 0x746   : > { %v1833_v2 = vmul.f32 0.03125, %v1831_v1  ;;  %v2921_v1 = vmov (!%p2480_p1), 0.0  }
 0x747   : > { %2680 = vmatprep.subr.bf16.mxu0 (!%p2480_p1), %v2921_v1  ;;  %2688 = vmatprep.subr.bf16.mxu1 (!%p2480_p1), %v2921_v1 }
 0x748   : > { %v1834_v3 = vsub.f32 %v1826_v63, %v1833_v2  ;;  %v2816_v2 = vld [vmem:[%s3568_s23 + $0x8] sm:$0xff] (!%p2480_p1)  }
 0x74a   : > { %v1835_v4 = vmul.f32 %v1834_v3, %v1834_v3 }
 0x74c   : > { %v1836_v5 = vsel %vm970_vm2, %v1835_v4, 0.0  ;;  %v2817_v4 = vld [vmem:[%s3569_s3] sm:$0xff] (!%p2480_p1)  }
 0x74d   : > { %1837 = vadd.xlane.f32.xlu1 %v1836_v5  ;;  %v2818_v5 = vld [vmem:[%s3570_s18 + $0x8] sm:$0xff] (!%p2480_p1)  }
 0x7da   : > { %v1838_v21 = vpop.xlane.xlu1 %1837 }
 0x7db   : > { %v1839_v8 = vmul.f32 0.03125, %v1838_v21 }
 0x7dd   : > { %v1840_v9 = vadd.f32 1e-12, %v1839_v8 }
 0x7df   : > { %2809 = vrsqrt.f32 %v1840_v9 }
 0x7e9   : > { %v2810_v10 = vpop.eup %2809 }
 0x7ea   : > { %v1842_v12 = vmul.f32 %v2810_v10, %v1834_v3 }
 0x7ec   : > { %v1849_v14 = vmul.f32 %v2463_v11, %v1842_v12 }
 0x7ee   : > { %v1856_v15 = vadd.f32 %v2464_v13, %v1849_v14  ;;  %v2147_v13 = vld [vmem:[%s3572_s22] sm:$0x1] (!%p2480_p1) }
 0x7f0   : > { %v1857_v16 = vpack.c.bf16 %v1856_v15, %v1856_v15 }
 0x7f2   : > { %2657 = vmatmul.mubr.msk.bf16.vlgmr.msra.gmra.mrb[36].mxu0 %vm970_vm2, %v1857_v16 }
 0x7f3   : > { %2681 = vmatpush3.bf16.msra.mxu0 (!%p2480_p1), %v2815_v0  ;;  %2684 = vmatprep.mubr.msk.bf16.mxu0 (!%p2480_p1), %vm2922_vm5, %v2921_v1 }
 0x7f4   : > { %2682 = vmatprep.subr.bf16.mxu0 (!%p2480_p1), %v2921_v1 }
 0x7f7   : > { %2683 = vmatpush3.bf16.msra.mxu0 (!%p2480_p1), %v2816_v2 }
 0x8c5   : > { %v1918_v28 = vpop.f32.mrb[36].mxu0 }
 0x8c6   : > { %v1919_v29 = vadd.f32 %v2465_v27, %v1918_v28  ;;  %v2658_v30 = vpop.f32.mrb[37].mxu0 }
 0x8c7   : > { %v1921_v31 = vpop.f32.mrb[38].mxu0 }
 0x8c8   : > { %v1924_v32 = vmul.f32 %v1919_v29, %v1919_v29  ;;  %v2659_v33 = vpop.f32.mrb[39].mxu0 }
 0x8ca   : > { %v1925_v35 = vmul.f32 %v1924_v32, %v1919_v29 }
 0x8cc   : > { %v1926_v36 = vmul.f32 0.044715, %v1925_v35 }
 0x8ce   : > { %v1927_v37 = vadd.f32 %v1926_v36, %v1919_v29 }
 0x8d0   : > { %v1928_v38 = vmul.f32 0.7978846, %v1927_v37 }
 0x8d2   : > { %2811 = vtanh.f32 %v1928_v38 }
 0x8dc   : > { %v2812_v39 = vpop.eup %2811 }
 0x8dd   : > { %v1930_v19 = vadd.f32 1.0, %v2812_v39 }
 0x8df   : > { %v1931_v34 = vmul.f32 0.5, %v1930_v19 }
 0x8e1   : > { %v1932_v40 = vmul.f32 %v1931_v34, %v1919_v29 }
 0x8e3   : > { %v1933_v41 = vpack.c.bf16 %v1932_v40, %v1932_v40 }
 0x8e5   : > { %2677 = vmatmul.mubr.bf16.vlgmr.msra.gmra.mrb[28].mxu1 %v1933_v41 }
 0x8e6   : > { %2692 = vmatprep.mubr.msk.bf16.mxu1 (!%p2480_p1), %vm2922_vm5, %v2921_v1  ;;  %2689 = vmatpush3.bf16.msra.mxu1 (!%p2480_p1), %v2817_v4 }
 0x8e7   : > { %2690 = vmatprep.subr.bf16.mxu1 (!%p2480_p1), %v2921_v1 }
 0x8ea   : > { %2691 = vmatpush3.bf16.msra.mxu1 (!%p2480_p1), %v2818_v5 }
 0x9b8   : > { %v2039_v43 = vpop.f32.mrb[28].mxu1 }
 0x9b9   : > { %v2040_v44 = vadd.f32 %v2469_v42, %v2039_v43  ;;  %v2678_v46 = vpop.f32.mrb[29].mxu1 }
 0x9ba   : > { %v2042_v47 = vpop.f32.mrb[30].mxu1 }
 0x9bb   : > { %v2679_v48 = vpop.f32.mrb[31].mxu1  ;;  %v2045_v49 = vadd.f32 %v2040_v44, %v1856_v15 }
 0x9bd   : > { %v2048_v50 = vsel %vm970_vm2, %v2045_v49, 0.0 }
 0x9be   : > { %2049 = vadd.xlane.f32.xlu0 %v2048_v50 }
 0xa4b   : > { %v2050_v51 = vpop.xlane.xlu0 %2049 }
 0xa4c   : > { %v2051_v52 = vmul.f32 0.03125, %v2050_v51 }
 0xa4e   : > { %v2052_v53 = vsub.f32 %v2045_v49, %v2051_v52 }
 0xa50   : > { %v2053_v55 = vmul.f32 %v2052_v53, %v2052_v53 }
 0xa52   : > { %v2054_v57 = vsel %vm970_vm2, %v2053_v55, 0.0 }
 0xa53   : > { %2055 = vadd.xlane.f32.xlu0 %v2054_v57 }
 0xae0   : > { %v2056_v58 = vpop.xlane.xlu0 %2055 }
 0xae1   : > { %v2057_v54 = vmul.f32 0.03125, %v2056_v58 }
 0xae3   : > { %v2058_v59 = vadd.f32 1e-12, %v2057_v54 }
 0xae5   : > { %2813 = vrsqrt.f32 %v2058_v59 }
 0xaef   : > { %v2814_v56 = vpop.eup %2813 }
 0xaf0   : > { %v2060_v45 = vmul.f32 %v2814_v56, %v2052_v53  ;;  %2079 = sbr.rel (%p2480_p1) target bundleno = 3250 (0xcb2), region = 112 }
 0xaf2   : > { %v2067_v62 = vmul.f32 %v2478_v60, %v2060_v45 }
 0xaf4   : > { %v2074_v63 = vadd.f32 %v2479_v61, %v2067_v62 }
 0xaf6   : > { %2075 = vst.msk [vmem:[#allocation2] sm:$0xff] %vm970_vm2, %v2074_v63  ;;  %v2080_v3 = vpack.c.bf16 (!%p2480_p1), %v2074_v63, %v2074_v63 }
 0xaf8   : > { %2685 = vmatmul.mubr.msk.bf16.vlgmr.msra.gmra.mrb[0].mxu0 %vm970_vm2, %v2080_v3 }
 0xbcb   : > { %v2135_v7 = vpop.f32.mrb[0].mxu0 }
 0xbcc   : > { %v2136_v21 = vadd.f32 %v2135_v7, %v2085_v6  ;;  %v2686_v8 = vpop.f32.mrb[1].mxu0 }
 0xbcd   : > { %v2138_v9 = vpop.f32.mrb[2].mxu0 }
 0xbce   : > { %2819 = vtanh.f32 %v2136_v21  ;;  %v2687_v10 = vpop.f32.mrb[3].mxu0 }
 0xbd8   : > { %v2820_v11 = vpop.eup %2819 }
 0xbd9   : > { %v2142_v12 = vpack.c.bf16 %v2820_v11, %v2820_v11 }
 0xbdb   : > { %2693 = vmatmul.mubr.msk.bf16.vlgmr.msra.gmra.mrb[0].mxu1 %vm970_vm2, %v2142_v12 }
 0xcae   : > { %v2197_v14 = vpop.f32.mrb[0].mxu1 }
 0xcaf   : > { %v2198_v15 = vadd.f32 %v2197_v14, %v2147_v13  ;;  %v2694_v16 = vpop.f32.mrb[1].mxu1 }
 0xcb0   : > { %v2200_v17 = vpop.f32.mrb[2].mxu1 }
 0xcb1   : > { %2203 = vst [vmem:[%s3178_s30] sm:$0x1] %v2198_v15  ;;  %v2695_v18 = vpop.f32.mrb[3].mxu1 }
 0xcb2 PF: > { %s3573_s27 = sld [smem:[#allocation9_spill]]  ;;  %s3575_s11 = sld [smem:[#allocation34_spill]] }
 0xcb3   : > { %s2217_s17 = sshll.u32 %s3178_s30, 4  ;;  %s3576_s29 = sand.u32 1, %s2891_s25   ;;  %s2218_s17 = int_to_ptr.vmem [resolvable:$true] %s2217_s17 }
 0xcb4   : > { %s2205_s1 = scalar_lea.sflag [#allocation4], %s3576_s29  ;;  %s2821_s24 = scalar_lea.vmem %s2218_s17, 16 }
 0xcb5   : > { %p2822_p2 = scmp.ne.s32.totalorder %s2218_s17, %s2821_s24  ;;  %s2923_s3 = smov [#allocation3]  }
 0xcb6   : > { %s2825_s28 = sshll.u32 %s2923_s3, 4  ;;  %s2826_s28 = int_to_ptr.vmem [resolvable:$false] %s2825_s28 }
 0xcb7   : > { %p2823_p4 = pnand %p2822_p2, %p3083_p3  ;;  %s2827_s16 = scalar_lea.vmem %s2826_s28, 32 }
 0xcb8   : > { %s2487_s21 = sshll.u32 %s3573_s27, 4  ;;  %p2828_p6 = scmp.lt.s32.totalorder %s2218_s17, %s2826_s28 }
 0xcb9   : > { %s3426_s0 = scalar_lea.hbm %s3575_s11, %s2487_s21  ;;  %p2824_p5 = pneg %p2823_p4 }
 0xcba   : > { %p2829_p7 = scmp.lt.s32.totalorder %s2827_s16, %s2821_s24 }
 0xcbc   : > { %p2830_p8 = por %p2829_p7, %p2828_p6 }
 0xcbe   : > { %p2831_p10 = pnand %p2830_p8, %p2824_p5 }
 0xcc0   : > { %2834 = shalt.err (!%p2831_p10)
}
 0xcc1   : > { %s2835_s30 = scalar_lea.hbm %s3426_s0, 16  ;;  %s2839_s5 = scalar_lea.hbm %s3575_s11, 32 }
 0xcc2   : > { %p2836_p11 = scmp.ne.s32.totalorder %s3426_s0, %s2835_s30  ;;  %p2840_p0 = scmp.lt.u32.totalorder %s3426_s0, %s3575_s11 }
 0xcc3   : > { %p2841_p1 = scmp.lt.u32.totalorder %s2839_s5, %s2835_s30  ;;  %p2843_p4 = scmp.lt.u32.totalorder %s2835_s30, %s3426_s0 }
 0xcc4   : > { %p2837_p12 = pnand %p2836_p11, %p3083_p3 }
 0xcc5   : > { %p2842_p2 = por %p2841_p1, %p2840_p0 }
 0xcc6   : > { %p2838_p13 = pneg %p2837_p12 }
 0xcc7   : > { %p2844_p5 = por %p2843_p4, %p2842_p2 }
 0xcc9   : > { %p2845_p6 = pnand %p2844_p5, %p2838_p13 }
 0xccb   : > { %2848 = shalt.err (!%p2845_p6)
}
 0xccc   : > { %2696 = dma.vmem_to_hbm [thread:$0]  (%p3083_p3), %s2218_s17, 16, %s3426_s0, %s2205_s1  }
 0xccd PF: > { %s3577_s22 = sld [smem:[#allocation12_spill]]  ;;  %s3578_s27 = sld [smem:[#allocation6_spill]] }
 0xcd3   : > { %p2702_p7 = scmp.ge.s32.totalorder %s3577_s22, 2  ;;  %s2229_s26 = sand.u32 1, %s3578_s27  }
 0xcd4   : > { %s2230_s2 = scalar_lea.sflag [#allocation4], %s2229_s26 }
 0xcd5   : > { %p2699_p8 = pnand %p2702_p7, %p3093_p9 }
 0xcd7   : > { %2882 = dma.done.wait (!%p2699_p8), %s2230_s2, 16  }
 0xcd8   : > { %2884 = vsyncadd (!%p2699_p8), %s2230_s2, 4294967280  ;;  %s34_s0 = sadd.s32 1, %s3577_s22   ;;  %s3580_s29 = sld [smem:[#allocation7_spill]] }
 0xcd9   : > { %p31_p10 = scmp.ge.s32.totalorder %s34_s0, 6   ;;  %s3581_s26 = sld [smem:[#allocation17_spill]] }
 0xcda   : > { %s3582_s27 = sld [smem:[#allocation10_spill]]  ;;  %s3583_s3 = sld [smem:[#allocation11_spill]] }
 0xcdb   : > { %s3584_s28 = sld [smem:[#allocation13_spill]]  ;;  %s3585_s4 = sld [smem:[#allocation15_spill]] }
 0xcdc   : > { %s3586_s2 = smov %s2891_s25  ;;  %33 = sbr.rel (!%p31_p10) target bundleno = 21 (0x15), region = 186 }
 0xcde   : > { %s3587_s25 = smov %s3580_s29 }
 0xce1   : > { %s3588_s29 = smov %s3585_s4 }
 0xce3   :  { %2234 = vsyncpa [#allocation4], 1 }
 0xce4   :  { %2236 = vsyncpa [#allocation4 + $0x1], 1 }

</bundles_post_ra>
